<compile_context>
chip_gen: v6e
topology: v6e:2x2x1
jax: 0.10.0
libtpu: 0.0.40
codegen_flags: <defaults>
</compile_context>

<pallas_src>
import jax
import jax.numpy as jnp
from jax.experimental import pallas as pl
from jax.experimental.pallas import tpu as pltpu

# ---- model constants (from the PyTorch module) ------------------------------
INPUT_DIM = 1
KERNEL_SIZE = 3
NUM_FILTERS = 64
OUTPUT_DIM = 18211
POOL_K = 2
POOL_S = 2
STRIDE = 1
SEQ_LEN = 606                                         # implied by fc in_features calc
CONV_OUT = (SEQ_LEN - KERNEL_SIZE) // STRIDE + 1      # 604
POOL_OUT = (CONV_OUT - POOL_K) // POOL_S + 1          # 302
FC_IN = NUM_FILTERS * POOL_OUT                        # 19328

# FC tiling / padding (bf16 weight tile: 4864*2304*2B ~= 21.4 MiB, double-buffered ~43 MiB)
TK = 4864                                             # 38 * 128
TN = 2304                                             # 18 * 128
K_PAD = 4 * TK                                        # 19456 >= FC_IN   (4 K-tiles)
N_PAD = 8 * TN                                        # 18432 >= OUTPUT_DIM (8 N-tiles, even)


# ---- kernel 1: fused Conv1d + ReLU + MaxPool1d -------------------------------
def conv_relu_pool_kernel(xs_ref, w_ref, b_ref, o_ref):
    # xs_ref: (4, B, 1, L_pool) where xs[m][b, 0, t] = x[b, 0, 2t + m]
    # w_ref : (3, F, 1)   conv weights (kernel-tap major)
    # b_ref : (1, F, 1)   conv bias
    # o_ref : (B, F, L_pool)  bf16
    x0 = xs_ref[0]
    x1 = xs_ref[1]
    x2 = xs_ref[2]
    x3 = xs_ref[3]                       # each (B, 1, L_pool)
    w = w_ref[...]                       # (3, F, 1)
    b = b_ref[...]                       # (1, F, 1)
    w0, w1, w2 = w[0], w[1], w[2]        # (F, 1)

    # conv output at even / odd positions (2t and 2t+1), broadcast to (B, F, L_pool)
    even = x0 * w0 + x1 * w1 + x2 * w2 + b
    odd = x1 * w0 + x2 * w1 + x3 * w2 + b
    # ReLU then MaxPool1d(kernel=2, stride=2)
    even = jnp.maximum(even, 0.0)
    odd = jnp.maximum(odd, 0.0)
    o_ref[...] = jnp.maximum(even, odd).astype(o_ref.dtype)


def conv_relu_pool(x, w_conv, b_conv):
    # x: (B, 1, SEQ_LEN) NCW, w_conv: (F, 1, K), b_conv: (F,)
    B = x.shape[0]
    xw = x[:, 0, :]                                            # (B, SEQ_LEN)
    shifts = [xw[:, m::2][:, :POOL_OUT] for m in range(4)]     # x[b, 2t+m]
    xs = jnp.stack([s[:, None, :] for s in shifts], axis=0)    # (4, B, 1, L_pool)
    w_bc = w_conv[:, 0, :].T[:, :, None]                       # (3, F, 1)
    b_bc = b_conv[None, :, None]                               # (1, F, 1)
    return pl.pallas_call(
        conv_relu_pool_kernel,
        out_shape=jax.ShapeDtypeStruct((B, NUM_FILTERS, POOL_OUT), jnp.bfloat16),
    )(xs, w_bc, b_bc)


# ---- kernel 2: tiled Linear (flat @ W^T + b), bf16 weights, f32 accumulation --
def fc_kernel(x_ref, w_ref, b_ref, o_ref):
    # x_ref: (B, TK) bf16, w_ref: (TK, TN) bf16, b_ref: (1, TN) f32, o_ref: (B, TN) f32
    k = pl.program_id(1)
    part = jnp.dot(x_ref[...], w_ref[...], preferred_element_type=jnp.float32)

    @pl.when(k == 0)
    def _():
        o_ref[...] = part + b_ref[...]

    @pl.when(k > 0)
    def _():
        o_ref[...] += part


def linear(x_flat_pad, wt_pad, b_pad):
    B, k_pad = x_flat_pad.shape
    _, n_pad = wt_pad.shape
    grid = (n_pad // TN, k_pad // TK)                          # (8, 4) = 32 steps
    return pl.pallas_call(
        fc_kernel,
        out_shape=jax.ShapeDtypeStruct((B, n_pad), jnp.float32),
        grid_spec=pltpu.PrefetchScalarGridSpec(
            num_scalar_prefetch=0,
            grid=grid,
            in_specs=[
                pl.BlockSpec((B, TK), lambda j, k: (0, k)),
                pl.BlockSpec((TK, TN), lambda j, k: (k, j)),
                pl.BlockSpec((1, TN), lambda j, k: (0, j)),
            ],
            out_specs=pl.BlockSpec((B, TN), lambda j, k: (0, j)),
        ),
        compiler_params=pltpu.CompilerParams(
            dimension_semantics=("parallel", "arbitrary"),
            # ~43 MiB of double-buffered bf16 weight tiles + small act/out buffers;
            # 48 MiB is safe on v7x (64 MiB physical VMEM) and fine on v5e/v6e.
            vmem_limit_bytes=48 << 20,
        ),
    )(x_flat_pad, wt_pad, b_pad)


# ---- full forward ------------------------------------------------------------
def cnn_forward(x, w_conv, b_conv, wt_pad, b_pad):
    B = x.shape[0]
    pooled = conv_relu_pool(x, w_conv, b_conv)          # (B, 64, 302) bf16
    flat = pooled.reshape(B, FC_IN)                     # matches x.view(B, -1) (NCW order)
    # TODO(synk): nn.Dropout(p=0.3) is identity at inference; training-mode mask not implemented.
    flat_pad = jnp.pad(flat, ((0, 0), (0, K_PAD - FC_IN)))   # zero-padded K rows multiply zeros
    y_pad = linear(flat_pad, wt_pad, b_pad)             # (B, N_PAD) f32
    return y_pad[:, :OUTPUT_DIM]


if __name__ == "__main__":
    key = jax.random.PRNGKey(0)
    k_x, k_wc, k_bc, k_wf, k_bf = jax.random.split(key, 5)

    B = 2
    x = jax.random.normal(k_x, (B, INPUT_DIM, SEQ_LEN), jnp.float32)

    # conv1 params: weight (F, 1, K), bias (F,)  -- deterministic synthetic init
    w_conv = jax.random.normal(k_wc, (NUM_FILTERS, INPUT_DIM, KERNEL_SIZE), jnp.float32) * 0.1
    b_conv = jax.random.normal(k_bc, (NUM_FILTERS,), jnp.float32) * 0.1

    # fc params generated directly in the transposed (K, N) layout, padded to tiles,
    # stored in bf16 (weight streaming is the HBM-bandwidth bottleneck).
    # Effective Linear weight is wt_pad[:FC_IN, :OUTPUT_DIM].T ; padded K-rows multiply
    # zero activations and padded N-columns are sliced off.
    wt_pad = jax.random.normal(k_wf, (K_PAD, N_PAD), jnp.bfloat16) * 0.01
    b_fc = jax.random.normal(k_bf, (OUTPUT_DIM,), jnp.float32) * 0.01
    b_pad = jnp.zeros((1, N_PAD), jnp.float32).at[0, :OUTPUT_DIM].set(b_fc)

    y = cnn_forward(x, w_conv, b_conv, wt_pad, b_pad)
    jax.block_until_ready(y)
    assert y.shape == (B, OUTPUT_DIM) and y.dtype == jnp.float32
    print("KERNEL_OK")
</pallas_src>

<mosaic_0001>
module attributes {stable_mosaic.version = 11 : i64} {
  func.func @conv_relu_pool_kernel(%arg0: memref<4x2x1x302xf32, #tpu.memory_space<vmem>>, %arg1: memref<3x64x1xf32, #tpu.memory_space<vmem>>, %arg2: memref<1x64x1xf32, #tpu.memory_space<vmem>>, %arg3: memref<2x64x302xbf16, #tpu.memory_space<vmem>>) attributes {dimension_semantics = [], scalar_prefetch = 0 : i64, scratch_operands = 0 : i64, tpu.core_type = #tpu.core_type<tc>} {
    %c0 = arith.constant 0 : index
    %c0_0 = arith.constant 0 : index
    %c0_1 = arith.constant 0 : index
    %c0_2 = arith.constant 0 : index
    %0 = vector.load %arg0[%c0, %c0_0, %c0_1, %c0_2] : memref<4x2x1x302xf32, #tpu.memory_space<vmem>>, vector<1x2x1x302xf32>
    %1 = vector.shape_cast %0 : vector<1x2x1x302xf32> to vector<2x1x302xf32>
    %c1 = arith.constant 1 : index
    %c0_3 = arith.constant 0 : index
    %c0_4 = arith.constant 0 : index
    %c0_5 = arith.constant 0 : index
    %2 = vector.load %arg0[%c1, %c0_3, %c0_4, %c0_5] : memref<4x2x1x302xf32, #tpu.memory_space<vmem>>, vector<1x2x1x302xf32>
    %3 = vector.shape_cast %2 : vector<1x2x1x302xf32> to vector<2x1x302xf32>
    %c2 = arith.constant 2 : index
    %c0_6 = arith.constant 0 : index
    %c0_7 = arith.constant 0 : index
    %c0_8 = arith.constant 0 : index
    %4 = vector.load %arg0[%c2, %c0_6, %c0_7, %c0_8] : memref<4x2x1x302xf32, #tpu.memory_space<vmem>>, vector<1x2x1x302xf32>
    %5 = vector.shape_cast %4 : vector<1x2x1x302xf32> to vector<2x1x302xf32>
    %c3 = arith.constant 3 : index
    %c0_9 = arith.constant 0 : index
    %c0_10 = arith.constant 0 : index
    %c0_11 = arith.constant 0 : index
    %6 = vector.load %arg0[%c3, %c0_9, %c0_10, %c0_11] : memref<4x2x1x302xf32, #tpu.memory_space<vmem>>, vector<1x2x1x302xf32>
    %7 = vector.shape_cast %6 : vector<1x2x1x302xf32> to vector<2x1x302xf32>
    %c0_12 = arith.constant 0 : index
    %c0_13 = arith.constant 0 : index
    %c0_14 = arith.constant 0 : index
    %8 = vector.load %arg1[%c0_12, %c0_13, %c0_14] : memref<3x64x1xf32, #tpu.memory_space<vmem>>, vector<3x64x1xf32>
    %c0_15 = arith.constant 0 : index
    %c0_16 = arith.constant 0 : index
    %c0_17 = arith.constant 0 : index
    %9 = vector.load %arg2[%c0_15, %c0_16, %c0_17] : memref<1x64x1xf32, #tpu.memory_space<vmem>>, vector<1x64x1xf32>
    %10 = vector.extract_strided_slice %8 {offsets = [0, 0, 0], sizes = [1, 64, 1], strides = [1, 1, 1]} : vector<3x64x1xf32> to vector<1x64x1xf32>
    %11 = vector.shape_cast %10 : vector<1x64x1xf32> to vector<64x1xf32>
    %12 = vector.extract_strided_slice %8 {offsets = [1, 0, 0], sizes = [1, 64, 1], strides = [1, 1, 1]} : vector<3x64x1xf32> to vector<1x64x1xf32>
    %13 = vector.shape_cast %12 : vector<1x64x1xf32> to vector<64x1xf32>
    %14 = vector.extract_strided_slice %8 {offsets = [2, 0, 0], sizes = [1, 64, 1], strides = [1, 1, 1]} : vector<3x64x1xf32> to vector<1x64x1xf32>
    %15 = vector.shape_cast %14 : vector<1x64x1xf32> to vector<64x1xf32>
    %16 = vector.shape_cast %11 : vector<64x1xf32> to vector<1x64x1xf32>
    %17 = vector.broadcast %1 : vector<2x1x302xf32> to vector<2x64x302xf32>
    %18 = vector.broadcast %16 : vector<1x64x1xf32> to vector<2x64x302xf32>
    %19 = arith.mulf %17, %18 : vector<2x64x302xf32>
    %20 = vector.shape_cast %13 : vector<64x1xf32> to vector<1x64x1xf32>
    %21 = vector.broadcast %3 : vector<2x1x302xf32> to vector<2x64x302xf32>
    %22 = vector.broadcast %20 : vector<1x64x1xf32> to vector<2x64x302xf32>
    %23 = arith.mulf %21, %22 : vector<2x64x302xf32>
    %24 = arith.addf %19, %23 : vector<2x64x302xf32>
    %25 = vector.shape_cast %15 : vector<64x1xf32> to vector<1x64x1xf32>
    %26 = vector.broadcast %5 : vector<2x1x302xf32> to vector<2x64x302xf32>
    %27 = vector.broadcast %25 : vector<1x64x1xf32> to vector<2x64x302xf32>
    %28 = arith.mulf %26, %27 : vector<2x64x302xf32>
    %29 = arith.addf %24, %28 : vector<2x64x302xf32>
    %30 = vector.broadcast %9 : vector<1x64x1xf32> to vector<2x64x302xf32>
    %31 = arith.addf %29, %30 : vector<2x64x302xf32>
    %32 = vector.shape_cast %11 : vector<64x1xf32> to vector<1x64x1xf32>
    %33 = vector.broadcast %3 : vector<2x1x302xf32> to vector<2x64x302xf32>
    %34 = vector.broadcast %32 : vector<1x64x1xf32> to vector<2x64x302xf32>
    %35 = arith.mulf %33, %34 : vector<2x64x302xf32>
    %36 = vector.shape_cast %13 : vector<64x1xf32> to vector<1x64x1xf32>
    %37 = vector.broadcast %5 : vector<2x1x302xf32> to vector<2x64x302xf32>
    %38 = vector.broadcast %36 : vector<1x64x1xf32> to vector<2x64x302xf32>
    %39 = arith.mulf %37, %38 : vector<2x64x302xf32>
    %40 = arith.addf %35, %39 : vector<2x64x302xf32>
    %41 = vector.shape_cast %15 : vector<64x1xf32> to vector<1x64x1xf32>
    %42 = vector.broadcast %7 : vector<2x1x302xf32> to vector<2x64x302xf32>
    %43 = vector.broadcast %41 : vector<1x64x1xf32> to vector<2x64x302xf32>
    %44 = arith.mulf %42, %43 : vector<2x64x302xf32>
    %45 = arith.addf %40, %44 : vector<2x64x302xf32>
    %46 = vector.broadcast %9 : vector<1x64x1xf32> to vector<2x64x302xf32>
    %47 = arith.addf %45, %46 : vector<2x64x302xf32>
    %cst = arith.constant 0.000000e+00 : f32
    %48 = vector.broadcast %cst : f32 to vector<2x64x302xf32>
    %49 = arith.maximumf %31, %48 : vector<2x64x302xf32>
    %cst_18 = arith.constant 0.000000e+00 : f32
    %50 = vector.broadcast %cst_18 : f32 to vector<2x64x302xf32>
    %51 = arith.maximumf %47, %50 : vector<2x64x302xf32>
    %52 = arith.maximumf %49, %51 : vector<2x64x302xf32>
    %53 = arith.truncf %52 : vector<2x64x302xf32> to vector<2x64x302xbf16>
    %c0_19 = arith.constant 0 : index
    %c0_20 = arith.constant 0 : index
    %c0_21 = arith.constant 0 : index
    %54 = vector.load %arg3[%c0_19, %c0_20, %c0_21] : memref<2x64x302xbf16, #tpu.memory_space<vmem>>, vector<2x64x302xbf16>
    tpu.vector_store %arg3[%c0_19, %c0_20, %c0_21], %53 {strides = array<i32>} : memref<2x64x302xbf16, #tpu.memory_space<vmem>>, vector<2x64x302xbf16>,
    return
  }
}

</mosaic_0001>

<bundles_post_ra>
// kernel: tpu_custom_call.1
= control target key start
LH: loop header
LB: loop body
LE: loop exit
PB: predicated region body
PF: predicated region fallthrough
CT: control target
= control target key end

     0   :  { %v1373_v2 = vmov 0   ;;  %s2568_s0 = inlined_call_operand.vmem [shape: f32[4,2,1,302], index: 0, kind: input, shape index: {}]   ;;  %s2569_s1 = inlined_call_operand.vmem [shape: f32[3,64,1], index: 1, kind: input, shape index: {}]   ;;  %s2570_s2 = inlined_call_operand.vmem [shape: f32[1,64,1], index: 2, kind: input, shape index: {}]   ;;  %s2571_s3 = inlined_call_operand.hbm [shape: bf16[2,64,302], index: 3, kind: output, shape index: {}]  }
   0x1   :  { %v28_v0 = vld [vmem:[%s2569_s1 + $0x10] sm:$0xff]  ;;  %v26_v1 = vld [vmem:[%s2569_s1] sm:$0xff]  ;;  %1350 = vset.pattern.permute.xlu1 %v1373_v2  ;;  %1349 = vset.pattern.permute.xlu0 %v1373_v2  ;;  %v29_v3 = vld [vmem:[%s2569_s1 + $0x18] sm:$0xff] }
   0x2   :  { %102 = vperm.xlu1 %1350, %v28_v0   ;;  %92 = vperm.xlu0 %1349, %v26_v1   ;;  %v27_v4 = vld [vmem:[%s2569_s1 + $0x8] sm:$0xff]  ;;  %v30_v6 = vld [vmem:[%s2569_s1 + $0x20] sm:$0xff]  ;;  %v33_v7 = vld [vmem:[%s2569_s1 + $0x38] sm:$0xff] }
   0x3   :  { %v31_v5 = vld [vmem:[%s2569_s1 + $0x28] sm:$0xff]  ;;  %v32_v8 = vld [vmem:[%s2569_s1 + $0x30] sm:$0xff] }
   0x6   :  { %107 = vperm.xlu1 %1350, %v29_v3   ;;  %97 = vperm.xlu0 %1349, %v27_v4  }
   0xa   :  { %117 = vperm.xlu1 %1350, %v31_v5   ;;  %112 = vperm.xlu0 %1349, %v30_v6  }
   0xb   :  { %8 = vsyncpa [#allocation3], 0  ;;  %v35_v9 = vld [vmem:[%s2569_s1 + $0x48] sm:$0xff]  ;;  %v34_v10 = vld [vmem:[%s2569_s1 + $0x40] sm:$0xff]  ;;  %v60_v33 = vlaneseq  ;;  %vm1227_vm0 = vcmask 371712  }
   0xc   :  { %v37_v11 = vld [vmem:[%s2569_s1 + $0x58] sm:$0xff]  ;;  %v36_v12 = vld [vmem:[%s2569_s1 + $0x50] sm:$0xff]  ;;  %v39_v13 = vld [vmem:[%s2569_s1 + $0x68] sm:$0xff] }
   0xd   :  { %v38_v14 = vld [vmem:[%s2569_s1 + $0x60] sm:$0xff]  ;;  %v41_v15 = vld [vmem:[%s2569_s1 + $0x78] sm:$0xff]  ;;  %v40_v16 = vld [vmem:[%s2569_s1 + $0x70] sm:$0xff]  ;;  %v61_v34 = vshrl.u32 %v60_v33, 7 }
   0xe   :  { %127 = vperm.xlu1 %1350, %v33_v7   ;;  %122 = vperm.xlu0 %1349, %v32_v8   ;;  %v43_v17 = vld [vmem:[%s2569_s1 + $0x88] sm:$0xff]  ;;  %v42_v18 = vld [vmem:[%s2569_s1 + $0x80] sm:$0xff]  ;;  %v45_v19 = vld [vmem:[%s2569_s1 + $0x98] sm:$0xff] }
   0xf   :  { %v44_v20 = vld [vmem:[%s2569_s1 + $0x90] sm:$0xff]  ;;  %v47_v21 = vld [vmem:[%s2569_s1 + $0xa8] sm:$0xff]  ;;  %v46_v22 = vld [vmem:[%s2569_s1 + $0xa0] sm:$0xff]  ;;  %v62_v35 = vsub.s32 0, %v61_v34  ;;  %v66_v36 = vsub.s32 1, %v61_v34  ;;  %v70_v37 = vsub.s32 2, %v61_v34 }
  0x10   :  { %v49_v23 = vld [vmem:[%s2569_s1 + $0xb8] sm:$0xff]  ;;  %v48_v24 = vld [vmem:[%s2569_s1 + $0xb0] sm:$0xff]  ;;  %v51_v25 = vld [vmem:[%s2570_s2 + $0x8] sm:$0xff] }
  0x11   :  { %v50_v26 = vld [vmem:[%s2570_s2] sm:$0xff]  ;;  %v53_v27 = vld [vmem:[%s2570_s2 + $0x18] sm:$0xff]  ;;  %v52_v28 = vld [vmem:[%s2570_s2 + $0x10] sm:$0xff] }
  0x12   :  { %217 = vperm.xlu1 %1350, %v35_v9   ;;  %212 = vperm.xlu0 %1349, %v34_v10   ;;  %v55_v29 = vld [vmem:[%s2570_s2 + $0x28] sm:$0xff]  ;;  %v54_v30 = vld [vmem:[%s2570_s2 + $0x20] sm:$0xff]  ;;  %v57_v31 = vld [vmem:[%s2570_s2 + $0x38] sm:$0xff] }
  0x13   :  { %v56_v32 = vld [vmem:[%s2570_s2 + $0x30] sm:$0xff]  ;;  %v15_v38 = vld [vmem:[%s2568_s0] sm:$0x7]  ;;  %v16_v39 = vld [vmem:[%s2568_s0 + $0x3] sm:$0x7] }
  0x14   :  { %v1275_v40 = vld [vmem:[%s2568_s0 + $0x6] sm:$0x7]  ;;  %v1276_v41 = vld [vmem:[%s2568_s0 + $0x9] sm:$0x7]  ;;  %v1505_v42 = vrot.slane %v15_v38, %v62_v35  ;;  %v1507_v43 = vrot.slane %v15_v38, %v66_v36  ;;  %v1509_v44 = vrot.slane %v15_v38, %v70_v37  ;;  %v1511_v45 = vrot.slane %v16_v39, %v62_v35  ;;  %v1277_v46 = vld [vmem:[%s2568_s0 + $0xc] sm:$0x7] }
  0x15   :  { %v1278_v47 = vld [vmem:[%s2568_s0 + $0xf] sm:$0x7]  ;;  %v1519_v48 = vrot.slane %v16_v39, %v66_v36  ;;  %v1521_v49 = vrot.slane %v16_v39, %v70_v37  ;;  %v1523_v50 = vrot.slane %v1275_v40, %v62_v35  ;;  %v1525_v51 = vrot.slane %v1275_v40, %v66_v36  ;;  %v1279_v52 = vld [vmem:[%s2568_s0 + $0x12] sm:$0x7]  ;;  %v1280_v57 = vld [vmem:[%s2568_s0 + $0x15] sm:$0x7] }
  0x16   :  { %227 = vperm.xlu1 %1350, %v37_v11   ;;  %222 = vperm.xlu0 %1349, %v36_v12   ;;  %2626 = vst [vmem:[#allocation5_spill] sm:$0xff] %v1505_v42  ;;  %2627 = vst [vmem:[#allocation6_spill] sm:$0xff] %v1507_v43  ;;  %v1530_v53 = vrot.slane %v1275_v40, %v70_v37  ;;  %v1532_v54 = vrot.slane %v1276_v41, %v62_v35  ;;  %s1374_s0 = smov [#allocation2]  }
  0x17   :  { %2628 = vst [vmem:[#allocation7_spill] sm:$0xff] %v1509_v44  ;;  %2629 = vst [vmem:[#allocation8_spill] sm:$0xff] %v1511_v45  ;;  %v1534_v55 = vrot.slane %v1276_v41, %v66_v36  ;;  %v1536_v56 = vrot.slane %v1276_v41, %v70_v37  ;;  %v1541_v58 = vrot.slane %v1277_v46, %v62_v35  ;;  %s1264_s9 = sshll.u32 %s1374_s0, 4  ;;  %s1265_s9 = int_to_ptr.vmem [resolvable:$true] %s1264_s9 }
  0x18   :  { %2630 = vst [vmem:[#allocation9_spill] sm:$0xff] %v1519_v48  ;;  %2631 = vst [vmem:[#allocation10_spill] sm:$0xff] %v1521_v49  ;;  %v1543_v59 = vrot.slane %v1277_v46, %v66_v36  ;;  %v1545_v60 = vrot.slane %v1277_v46, %v70_v37  ;;  %v1547_v61 = vrot.slane %v1278_v47, %v62_v35  ;;  %s1351_s10 = scalar_lea.vmem %s1265_s9, 3072  ;;  %p1356_p1 = scmp.lt.s32.totalorder %s1265_s9, %s1265_s9 }
  0x19   :  { %2632 = vst [vmem:[#allocation11_spill] sm:$0xff] %v1523_v50  ;;  %2633 = vst [vmem:[#allocation12_spill] sm:$0xff] %v1525_v51  ;;  %v1549_v62 = vrot.slane %v1278_v47, %v66_v36  ;;  %v1551_v63 = vrot.slane %v1278_v47, %v70_v37  ;;  %v1553_v0 = vrot.slane %v1279_v52, %v62_v35  ;;  %p1352_p0 = scmp.ne.s32.totalorder %s1265_s9, %s1351_s10  ;;  %p1357_p2 = scmp.lt.s32.totalorder %s1351_s10, %s1351_s10 }
  0x1a   :  { %237 = vperm.xlu1 %1350, %v39_v13   ;;  %232 = vperm.xlu0 %1349, %v38_v14   ;;  %2634 = vst [vmem:[#allocation13_spill] sm:$0xff] %v1530_v53  ;;  %2635 = vst [vmem:[#allocation14_spill] sm:$0xff] %v1532_v54  ;;  %v1555_v1 = vrot.slane %v1279_v52, %v66_v36  ;;  %v1557_v4 = vrot.slane %v1279_v52, %v70_v37 }
  0x1b   :  { %2636 = vst [vmem:[#allocation15_spill] sm:$0xff] %v1534_v55  ;;  %2637 = vst [vmem:[#allocation16_spill] sm:$0xff] %v1536_v56  ;;  %v1559_v5 = vrot.slane %v1280_v57, %v62_v35  ;;  %v1561_v6 = vrot.slane %v1280_v57, %v66_v36  ;;  %v1563_v7 = vrot.slane %v1280_v57, %v70_v37  ;;  %p1358_p3 = por %p1357_p2, %p1356_p1 }
  0x1c   :  { %2638 = vst [vmem:[#allocation17_spill] sm:$0xff] %v1541_v58  ;;  %2639 = vst [vmem:[#allocation18_spill] sm:$0xff] %v1543_v59 }
  0x1d   :  { %2640 = vst [vmem:[#allocation19_spill] sm:$0xff] %v1545_v60  ;;  %2641 = vst [vmem:[#allocation20_spill] sm:$0xff] %v1547_v61  ;;  %p1359_p4 = pnand %p1358_p3, %p1352_p0 }
  0x1e   :  { %247 = vperm.xlu1 %1350, %v41_v15   ;;  %242 = vperm.xlu0 %1349, %v40_v16   ;;  %2642 = vst [vmem:[#allocation21_spill] sm:$0xff] %v1549_v62  ;;  %2643 = vst [vmem:[#allocation22_spill] sm:$0xff] %v1551_v63 }
  0x1f   :  { %2644 = vst [vmem:[#allocation23_spill] sm:$0xff] %v1553_v0  ;;  %2645 = vst [vmem:[#allocation24_spill] sm:$0xff] %v1555_v1 }
  0x20   :  { %2646 = vst [vmem:[#allocation25_spill] sm:$0xff] %v1557_v4  ;;  %2647 = vst [vmem:[#allocation26_spill] sm:$0xff] %v1559_v5 }
  0x21   :  { %2648 = vst [vmem:[#allocation27_spill] sm:$0xff] %v1561_v6  ;;  %2649 = vst [vmem:[#allocation28_spill] sm:$0xff] %v1563_v7 }
  0x22   :  { %385 = vperm.xlu1 %1350, %v43_v17   ;;  %380 = vperm.xlu0 %1349, %v42_v18  }
  0x26   :  { %395 = vperm.xlu1 %1350, %v45_v19   ;;  %390 = vperm.xlu0 %1349, %v44_v20  }
  0x2a   :  { %405 = vperm.xlu1 %1350, %v47_v21   ;;  %400 = vperm.xlu0 %1349, %v46_v22  }
  0x2e   :  { %415 = vperm.xlu1 %1350, %v49_v23   ;;  %410 = vperm.xlu0 %1349, %v48_v24  }
  0x32   :  { %521 = vperm.xlu1 %1350, %v51_v25   ;;  %516 = vperm.xlu0 %1349, %v50_v26  }
  0x36   :  { %531 = vperm.xlu1 %1350, %v53_v27   ;;  %526 = vperm.xlu0 %1349, %v52_v28  }
  0x3a   :  { %541 = vperm.xlu1 %1350, %v55_v29   ;;  %536 = vperm.xlu0 %1349, %v54_v30  }
  0x3e   :  { %551 = vperm.xlu1 %1350, %v57_v31   ;;  %546 = vperm.xlu0 %1349, %v56_v32  }
  0x7d   :  { %v103_v2 = vpop.permute.xlu1 %102  ;;  %v93_v3 = vpop.permute.xlu0 %92 }
  0x7e   :  { %v1566_v8 = vmul.f32 %v103_v2, %v1505_v42  ;;  %v1569_v9 = vmul.f32 %v103_v2, %v1507_v43  ;;  %v1572_v10 = vmul.f32 %v103_v2, %v1509_v44  ;;  %v1575_v11 = vmul.f32 %v103_v2, %v1511_v45 }
  0x7f   :  { %v1578_v12 = vmul.f32 %v103_v2, %v1519_v48  ;;  %v1581_v13 = vmul.f32 %v103_v2, %v1521_v49  ;;  %v1584_v14 = vmul.f32 %v1523_v50, %v103_v2  ;;  %v1587_v15 = vmul.f32 %v1525_v51, %v103_v2 }
  0x80   :  { %2650 = vst [vmem:[#allocation29_spill] sm:$0xff] %v1566_v8  ;;  %2651 = vst [vmem:[#allocation30_spill] sm:$0xff] %v1569_v9  ;;  %v1590_v16 = vmul.f32 %v1530_v53, %v103_v2  ;;  %v1593_v17 = vmul.f32 %v1532_v54, %v103_v2  ;;  %v1596_v18 = vmul.f32 %v1534_v55, %v103_v2 }
  0x81   :  { %2652 = vst [vmem:[#allocation31_spill] sm:$0xff] %v1572_v10  ;;  %2653 = vst [vmem:[#allocation32_spill] sm:$0xff] %v1575_v11  ;;  %v1599_v19 = vmul.f32 %v1536_v56, %v103_v2  ;;  %v1602_v20 = vmul.f32 %v93_v3, %v1505_v42  ;;  %v1605_v21 = vmul.f32 %v93_v3, %v1507_v43  ;;  %v108_v24 = vpop.permute.xlu1 %107  ;;  %v98_v25 = vpop.permute.xlu0 %97 }
  0x82   :  { %2654 = vst [vmem:[#allocation33_spill] sm:$0xff] %v1578_v12  ;;  %2655 = vst [vmem:[#allocation34_spill] sm:$0xff] %v1581_v13  ;;  %v1608_v22 = vmul.f32 %v93_v3, %v1509_v44  ;;  %v1611_v23 = vmul.f32 %v93_v3, %v1511_v45  ;;  %v1614_v26 = vmul.f32 %v93_v3, %v1519_v48 }
  0x83   :  { %2656 = vst [vmem:[#allocation35_spill] sm:$0xff] %v1584_v14  ;;  %2657 = vst [vmem:[#allocation36_spill] sm:$0xff] %v1587_v15  ;;  %v1617_v27 = vmul.f32 %v93_v3, %v1521_v49  ;;  %v1620_v28 = vmul.f32 %v1523_v50, %v93_v3  ;;  %v1623_v29 = vmul.f32 %v1525_v51, %v93_v3 }
  0x84   :  { %2658 = vst [vmem:[#allocation37_spill] sm:$0xff] %v1590_v16  ;;  %2659 = vst [vmem:[#allocation38_spill] sm:$0xff] %v1593_v17  ;;  %v1626_v30 = vmul.f32 %v1530_v53, %v93_v3  ;;  %v1629_v31 = vmul.f32 %v1532_v54, %v93_v3  ;;  %v1632_v32 = vmul.f32 %v1534_v55, %v93_v3 }
  0x85   :  { %2660 = vst [vmem:[#allocation39_spill] sm:$0xff] %v1596_v18  ;;  %2661 = vst [vmem:[#allocation40_spill] sm:$0xff] %v1599_v19  ;;  %v1635_v33 = vmul.f32 %v1536_v56, %v93_v3  ;;  %v1638_v34 = vmul.f32 %v108_v24, %v1505_v42  ;;  %v1641_v35 = vmul.f32 %v108_v24, %v1507_v43  ;;  %v118_v46 = vpop.permute.xlu1 %117  ;;  %v113_v3 = vpop.permute.xlu0 %112 }
  0x86   :  { %v1644_v36 = vmul.f32 %v108_v24, %v1509_v44  ;;  %v1647_v37 = vmul.f32 %v108_v24, %v1511_v45  ;;  %v1650_v38 = vmul.f32 %v108_v24, %v1519_v48  ;;  %v1653_v39 = vmul.f32 %v108_v24, %v1521_v49 }
  0x87   :  { %v1656_v40 = vmul.f32 %v1523_v50, %v108_v24  ;;  %v1659_v41 = vmul.f32 %v1525_v51, %v108_v24  ;;  %v1662_v47 = vmul.f32 %v1530_v53, %v108_v24  ;;  %v1665_v52 = vmul.f32 %v1532_v54, %v108_v24 }
  0x88   :  { %v1668_v57 = vmul.f32 %v1534_v55, %v108_v24  ;;  %v1671_v2 = vmul.f32 %v1536_v56, %v108_v24  ;;  %v133_v7 = vmul.f32 %v98_v25, %v1505_v42  ;;  %v134_v6 = vmul.f32 %v98_v25, %v1507_v43 }
  0x89   :  { %2662 = vst [vmem:[#allocation41_spill] sm:$0xff] %v1665_v52  ;;  %v135_v5 = vmul.f32 %v98_v25, %v1509_v44  ;;  %v157_v4 = vmul.f32 %v98_v25, %v1511_v45  ;;  %v158_v1 = vmul.f32 %v98_v25, %v1519_v48  ;;  %v159_v0 = vmul.f32 %v98_v25, %v1521_v49  ;;  %v1685_v14 = vpop.permute.xlu1 %127 }
  0x8a   :  { %2663 = vst [vmem:[#allocation42_spill] sm:$0xff] %v1668_v57  ;;  %2664 = vst [vmem:[#allocation43_spill] sm:$0xff] %v1671_v2  ;;  %v605_v19 = vmul.f32 %v1523_v50, %v98_v25  ;;  %v606_v18 = vmul.f32 %v1525_v51, %v98_v25  ;;  %v607_v24 = vmul.f32 %v1530_v53, %v98_v25 }
  0x8b   :  { %v629_v17 = vmul.f32 %v1532_v54, %v98_v25  ;;  %v630_v16 = vmul.f32 %v1534_v55, %v98_v25  ;;  %v631_v15 = vmul.f32 %v1536_v56, %v98_v25  ;;  %2665 = vst [vmem:[#allocation44_spill] sm:$0xff] %v1685_v14  ;;  %v1688_v13 = vmul.f32 %v118_v46, %v1505_v42 }
  0x8c   :  { %v1691_v12 = vmul.f32 %v118_v46, %v1507_v43  ;;  %v1694_v11 = vmul.f32 %v118_v46, %v1509_v44  ;;  %v1697_v10 = vmul.f32 %v118_v46, %v1511_v45  ;;  %v1700_v9 = vmul.f32 %v118_v46, %v1519_v48 }
  0x8d   :  { %2666 = vst [vmem:[#allocation45_spill] sm:$0xff] %v1688_v13  ;;  %v1703_v8 = vmul.f32 %v118_v46, %v1521_v49  ;;  %v1706_v25 = vmul.f32 %v1523_v50, %v118_v46  ;;  %v1709_v14 = vmul.f32 %v1525_v51, %v118_v46  ;;  %v1723_v13 = vpop.permute.xlu0 %122 }
  0x8e   :  { %2667 = vst [vmem:[#allocation46_spill] sm:$0xff] %v1691_v12  ;;  %2668 = vst [vmem:[#allocation47_spill] sm:$0xff] %v1694_v11  ;;  %v1712_v12 = vmul.f32 %v1530_v53, %v118_v46  ;;  %v1715_v11 = vmul.f32 %v1532_v54, %v118_v46 }
  0x8f   :  { %2669 = vst [vmem:[#allocation48_spill] sm:$0xff] %v1697_v10  ;;  %2670 = vst [vmem:[#allocation49_spill] sm:$0xff] %v1700_v9  ;;  %v1718_v10 = vmul.f32 %v1534_v55, %v118_v46  ;;  %v1721_v9 = vmul.f32 %v1536_v56, %v118_v46  ;;  %v1741_v46 = vmul.f32 %v113_v3, %v1521_v49 }
  0x90   :  { %2671 = vst [vmem:[#allocation50_spill] sm:$0xff] %v1703_v8  ;;  %2672 = vst [vmem:[#allocation51_spill] sm:$0xff] %v1706_v25  ;;  %v1726_v8 = vmul.f32 %v113_v3, %v1505_v42  ;;  %v1729_v25 = vmul.f32 %v113_v3, %v1507_v43  ;;  %v1747_v42 = vmul.f32 %v1525_v51, %v113_v3 }
  0x91   :  { %2673 = vst [vmem:[#allocation52_spill] sm:$0xff] %v1709_v14  ;;  %2674 = vst [vmem:[#allocation53_spill] sm:$0xff] %v1712_v12  ;;  %v1732_v14 = vmul.f32 %v113_v3, %v1509_v44  ;;  %v1735_v12 = vmul.f32 %v113_v3, %v1511_v45  ;;  %v1750_v43 = vmul.f32 %v1530_v53, %v113_v3 }
  0x92   :  { %2675 = vst [vmem:[#allocation54_spill] sm:$0xff] %v1715_v11  ;;  %2676 = vst [vmem:[#allocation55_spill] sm:$0xff] %v1718_v10  ;;  %v218_v11 = vpop.permute.xlu1 %217  ;;  %v1738_v10 = vmul.f32 %v113_v3, %v1519_v48  ;;  %v1753_v44 = vmul.f32 %v1532_v54, %v113_v3  ;;  %v1756_v45 = vmul.f32 %v1534_v55, %v113_v3 }
  0x93   :  { %2677 = vst [vmem:[#allocation56_spill] sm:$0xff] %v1721_v9  ;;  %2678 = vst [vmem:[#allocation57_spill] sm:$0xff] %v1723_v13  ;;  %v1744_v13 = vmul.f32 %v1523_v50, %v113_v3  ;;  %v1759_v48 = vmul.f32 %v1536_v56, %v113_v3  ;;  %v253_v49 = vmul.f32 %v218_v11, %v1523_v50 }
  0x94   :  { %2679 = vst [vmem:[#allocation58_spill] sm:$0xff] %v1726_v8  ;;  %2680 = vst [vmem:[#allocation59_spill] sm:$0xff] %v1729_v25  ;;  %v213_v25 = vpop.permute.xlu0 %212  ;;  %v655_v2 = vmul.f32 %v1545_v60, %v218_v11  ;;  %v677_v57 = vmul.f32 %v1547_v61, %v218_v11  ;;  %v678_v52 = vmul.f32 %v1549_v62, %v218_v11 }
  0x95   :  { %2681 = vst [vmem:[#allocation60_spill] sm:$0xff] %v1732_v14  ;;  %2682 = vst [vmem:[#allocation61_spill] sm:$0xff] %v1735_v12  ;;  %v654_v12 = vmul.f32 %v1543_v59, %v218_v11 }
  0x96   :  { %2683 = vst [vmem:[#allocation62_spill] sm:$0xff] %v1738_v10  ;;  %2684 = vst [vmem:[#allocation63_spill] sm:$0xff] %v1741_v46  ;;  %v254_v46 = vmul.f32 %v218_v11, %v1525_v51  ;;  %v278_v10 = vmul.f32 %v218_v11, %v1534_v55 }
  0x97   :  { %2685 = vst [vmem:[#allocation64_spill] sm:$0xff] %v1744_v13  ;;  %2686 = vst [vmem:[#allocation65_spill] sm:$0xff] %v1747_v42  ;;  %v255_v13 = vmul.f32 %v218_v11, %v1530_v53  ;;  %v277_v42 = vmul.f32 %v218_v11, %v1532_v54 }
  0x98   :  { %2687 = vst [vmem:[#allocation66_spill] sm:$0xff] %v1750_v43  ;;  %2688 = vst [vmem:[#allocation67_spill] sm:$0xff] %v1753_v44  ;;  %v279_v43 = vmul.f32 %v218_v11, %v1536_v56  ;;  %v653_v44 = vmul.f32 %v1541_v58, %v218_v11  ;;  %v1771_v3 = vadd.f32 %v254_v46, %v134_v6 }
  0x99   :  { %2689 = vst [vmem:[#allocation68_spill] sm:$0xff] %v1756_v45  ;;  %2690 = vst [vmem:[#allocation69_spill] sm:$0xff] %v1759_v48  ;;  %v1769_v45 = vadd.f32 %v253_v49, %v133_v7  ;;  %v1773_v48 = vadd.f32 %v255_v13, %v135_v5  ;;  %v1775_v14 = vadd.f32 %v277_v42, %v157_v4 }
  0x9a   :  { %v1777_v8 = vadd.f32 %v278_v10, %v158_v1  ;;  %v1779_v9 = vadd.f32 %v279_v43, %v159_v0  ;;  %v679_v49 = vmul.f32 %v1551_v63, %v218_v11  ;;  %v1785_v7 = vadd.f32 %v653_v44, %v605_v19 }
  0x9b   :  { %v1787_v6 = vadd.f32 %v654_v12, %v606_v18  ;;  %v1789_v5 = vadd.f32 %v655_v2, %v607_v24  ;;  %v1791_v42 = vadd.f32 %v677_v57, %v629_v17  ;;  %v250_v1 = vmul.f32 %v213_v25, %v1523_v50 }
  0x9c   :  { %v251_v43 = vmul.f32 %v213_v25, %v1525_v51  ;;  %v1795_v0 = vadd.f32 %v678_v52, %v630_v16  ;;  %v1797_v4 = vadd.f32 %v679_v49, %v631_v15  ;;  %v252_v10 = vmul.f32 %v213_v25, %v1530_v53  ;;  %v228_v52 = vpop.permute.xlu1 %227 }
  0x9d   :  { %v274_v11 = vmul.f32 %v213_v25, %v1532_v54  ;;  %v275_v44 = vmul.f32 %v213_v25, %v1534_v55  ;;  %v276_v12 = vmul.f32 %v213_v25, %v1536_v56  ;;  %v1804_v13 = vadd.f32 %v250_v1, %v1602_v20 }
  0x9e   :  { %v1807_v17 = vadd.f32 %v251_v43, %v1605_v21  ;;  %v1810_v18 = vadd.f32 %v252_v10, %v1608_v22  ;;  %v650_v16 = vmul.f32 %v1541_v58, %v213_v25  ;;  %v651_v19 = vmul.f32 %v1543_v59, %v213_v25 }
  0x9f   :  { %v1813_v15 = vadd.f32 %v274_v11, %v1611_v23  ;;  %v1818_v57 = vadd.f32 %v275_v44, %v1614_v26  ;;  %v1821_v20 = vadd.f32 %v276_v12, %v1617_v27  ;;  %v652_v21 = vmul.f32 %v1545_v60, %v213_v25 }
  0xa0   :  { %v674_v2 = vmul.f32 %v1547_v61, %v213_v25  ;;  %v675_v22 = vmul.f32 %v1549_v62, %v213_v25  ;;  %v676_v23 = vmul.f32 %v1551_v63, %v213_v25  ;;  %v1828_v24 = vadd.f32 %v650_v16, %v1620_v28  ;;  %v223_v16 = vpop.permute.xlu0 %222 }
  0xa1   :  { %v1831_v46 = vadd.f32 %v651_v19, %v1623_v29  ;;  %v1834_v26 = vadd.f32 %v652_v21, %v1626_v30  ;;  %v259_v49 = vmul.f32 %v228_v52, %v1523_v50  ;;  %v260_v1 = vmul.f32 %v228_v52, %v1525_v51 }
  0xa2   :  { %v1837_v27 = vadd.f32 %v674_v2, %v1629_v31  ;;  %v1842_v43 = vadd.f32 %v675_v22, %v1632_v32  ;;  %v1845_v25 = vadd.f32 %v676_v23, %v1635_v33  ;;  %v261_v28 = vmul.f32 %v228_v52, %v1530_v53  ;;  %v2703_v23 = vld [vmem:[#allocation41_spill] sm:$0xff] }
  0xa3   :  { %v283_v29 = vmul.f32 %v228_v52, %v1532_v54  ;;  %v284_v30 = vmul.f32 %v228_v52, %v1534_v55  ;;  %v285_v10 = vmul.f32 %v228_v52, %v1536_v56  ;;  %v1852_v31 = vadd.f32 %v259_v49, %v1638_v34 }
  0xa4   :  { %2691 = vst [vmem:[#allocation70_spill] sm:$0xff] %v1837_v27  ;;  %2692 = vst [vmem:[#allocation71_spill] sm:$0xff] %v1842_v43  ;;  %v1855_v11 = vadd.f32 %v260_v1, %v1641_v35  ;;  %v1858_v32 = vadd.f32 %v261_v28, %v1644_v36  ;;  %v659_v44 = vmul.f32 %v1541_v58, %v228_v52  ;;  %v238_v28 = vpop.permute.xlu1 %237 }
  0xa5   :  { %2693 = vst [vmem:[#allocation72_spill] sm:$0xff] %v1845_v25  ;;  %2694 = vst [vmem:[#allocation73_spill] sm:$0xff] %v1852_v31  ;;  %v1861_v33 = vadd.f32 %v283_v29, %v1647_v37  ;;  %v660_v12 = vmul.f32 %v1543_v59, %v228_v52  ;;  %v1866_v19 = vadd.f32 %v284_v30, %v1650_v38  ;;  %v2705_v29 = vld [vmem:[#allocation42_spill] sm:$0xff] }
  0xa6   :  { %2695 = vst [vmem:[#allocation74_spill] sm:$0xff] %v1855_v11  ;;  %2696 = vst [vmem:[#allocation75_spill] sm:$0xff] %v1858_v32  ;;  %v1869_v34 = vadd.f32 %v285_v10, %v1653_v39  ;;  %v661_v35 = vmul.f32 %v1545_v60, %v228_v52  ;;  %v683_v21 = vmul.f32 %v1547_v61, %v228_v52 }
  0xa7   :  { %2697 = vst [vmem:[#allocation76_spill] sm:$0xff] %v1861_v33  ;;  %2698 = vst [vmem:[#allocation77_spill] sm:$0xff] %v1866_v19  ;;  %v684_v36 = vmul.f32 %v1549_v62, %v228_v52  ;;  %v685_v37 = vmul.f32 %v1551_v63, %v228_v52  ;;  %v1876_v2 = vadd.f32 %v659_v44, %v1656_v40  ;;  %v2707_v52 = vld [vmem:[#allocation43_spill] sm:$0xff] }
  0xa8   :  { %2699 = vst [vmem:[#allocation78_spill] sm:$0xff] %v1869_v34  ;;  %v1879_v22 = vadd.f32 %v660_v12, %v1659_v41  ;;  %v1882_v38 = vadd.f32 %v661_v35, %v1662_v47  ;;  %v1885_v39 = vadd.f32 %v683_v21, %v2703_v23  ;;  %v256_v49 = vmul.f32 %v223_v16, %v1523_v50  ;;  %v2709_v12 = vld [vmem:[#allocation29_spill] sm:$0xff]  ;;  %v2711_v21 = vld [vmem:[#allocation30_spill] sm:$0xff] }
  0xa9   :  { %2700 = vst [vmem:[#allocation79_spill] sm:$0xff] %v1876_v2  ;;  %v257_v1 = vmul.f32 %v223_v16, %v1525_v51  ;;  %v1890_v30 = vadd.f32 %v684_v36, %v2705_v29  ;;  %v1893_v40 = vadd.f32 %v685_v37, %v2707_v52  ;;  %v258_v41 = vmul.f32 %v223_v16, %v1530_v53  ;;  %v2715_v29 = vld [vmem:[#allocation32_spill] sm:$0xff] }
  0xaa   :  { %2701 = vst [vmem:[#allocation80_spill] sm:$0xff] %v1879_v22  ;;  %2702 = vst [vmem:[#allocation81_spill] sm:$0xff] %v1882_v38  ;;  %v280_v10 = vmul.f32 %v223_v16, %v1532_v54  ;;  %v281_v47 = vmul.f32 %v223_v16, %v1534_v55  ;;  %v282_v44 = vmul.f32 %v223_v16, %v1536_v56  ;;  %v2719_v22 = vld [vmem:[#allocation34_spill] sm:$0xff] }
  0xab   :  { %2704 = vst [vmem:[#allocation41_spill] sm:$0xff] %v1885_v39  ;;  %2706 = vst [vmem:[#allocation42_spill] sm:$0xff] %v1890_v30  ;;  %v1900_v35 = vadd.f32 %v256_v49, %v2709_v12  ;;  %v1903_v23 = vadd.f32 %v257_v1, %v2711_v21  ;;  %v2713_v39 = vld [vmem:[#allocation31_spill] sm:$0xff]  ;;  %v656_v52 = vmul.f32 %v1541_v58, %v223_v16  ;;  %v2717_v30 = vld [vmem:[#allocation33_spill] sm:$0xff] }
  0xac   :  { %2708 = vst [vmem:[#allocation43_spill] sm:$0xff] %v1893_v40  ;;  %v1906_v36 = vadd.f32 %v258_v41, %v2713_v39  ;;  %v1909_v37 = vadd.f32 %v280_v10, %v2715_v29  ;;  %v657_v40 = vmul.f32 %v1543_v59, %v223_v16  ;;  %v1914_v38 = vadd.f32 %v281_v47, %v2717_v30  ;;  %v2721_v10 = vld [vmem:[#allocation35_spill] sm:$0xff]  ;;  %v2723_v21 = vld [vmem:[#allocation36_spill] sm:$0xff]  ;;  %v2727_v47 = vld [vmem:[#allocation38_spill] sm:$0xff] }
  0xad   :  { %2710 = vst [vmem:[#allocation29_spill] sm:$0xff] %v1900_v35  ;;  %2712 = vst [vmem:[#allocation30_spill] sm:$0xff] %v1903_v23  ;;  %v1917_v2 = vadd.f32 %v282_v44, %v2719_v22  ;;  %v658_v49 = vmul.f32 %v1545_v60, %v223_v16  ;;  %v680_v1 = vmul.f32 %v1547_v61, %v223_v16  ;;  %v2744_v23 = vld [vmem:[#allocation50_spill] sm:$0xff] }
  0xae   :  { %2714 = vst [vmem:[#allocation31_spill] sm:$0xff] %v1906_v36  ;;  %2716 = vst [vmem:[#allocation32_spill] sm:$0xff] %v1909_v37  ;;  %v681_v39 = vmul.f32 %v1549_v62, %v223_v16  ;;  %v682_v41 = vmul.f32 %v1551_v63, %v223_v16  ;;  %v1924_v12 = vadd.f32 %v656_v52, %v2721_v10  ;;  %v2725_v37 = vld [vmem:[#allocation37_spill] sm:$0xff]  ;;  %v2730_v36 = vld [vmem:[#allocation39_spill] sm:$0xff] }
  0xaf   :  { %2718 = vst [vmem:[#allocation33_spill] sm:$0xff] %v1914_v38  ;;  %2720 = vst [vmem:[#allocation34_spill] sm:$0xff] %v1917_v2  ;;  %v1927_v29 = vadd.f32 %v657_v40, %v2723_v21  ;;  %v1930_v30 = vadd.f32 %v658_v49, %v2725_v37  ;;  %v1933_v22 = vadd.f32 %v680_v1, %v2727_v47  ;;  %v1937_v38 = vpop.permute.xlu1 %247  ;;  %v2732_v52 = vld [vmem:[#allocation40_spill] sm:$0xff]  ;;  %v233_v49 = vpop.permute.xlu0 %232  ;;  %v2734_v47 = vld [vmem:[#allocation45_spill] sm:$0xff] }
  0xb0   :  { %2722 = vst [vmem:[#allocation35_spill] sm:$0xff] %v1924_v12  ;;  %v265_v44 = vmul.f32 %v238_v28, %v1523_v50  ;;  %v266_v2 = vmul.f32 %v238_v28, %v1525_v51  ;;  %2729 = vst [vmem:[#allocation82_spill] sm:$0xff] %v1937_v38  ;;  %v1940_v16 = vadd.f32 %v681_v39, %v2730_v36  ;;  %v2738_v36 = vld [vmem:[#allocation47_spill] sm:$0xff] }
  0xb1   :  { %2724 = vst [vmem:[#allocation36_spill] sm:$0xff] %v1927_v29  ;;  %2726 = vst [vmem:[#allocation37_spill] sm:$0xff] %v1930_v30  ;;  %v1943_v10 = vadd.f32 %v682_v41, %v2732_v52  ;;  %v267_v40 = vmul.f32 %v238_v28, %v1530_v53  ;;  %v289_v37 = vmul.f32 %v238_v28, %v1532_v54  ;;  %v2736_v30 = vld [vmem:[#allocation46_spill] sm:$0xff]  ;;  %v2740_v41 = vld [vmem:[#allocation48_spill] sm:$0xff] }
  0xb2   :  { %2728 = vst [vmem:[#allocation38_spill] sm:$0xff] %v1933_v22  ;;  %2731 = vst [vmem:[#allocation39_spill] sm:$0xff] %v1940_v16  ;;  %v290_v1 = vmul.f32 %v238_v28, %v1534_v55  ;;  %v291_v21 = vmul.f32 %v238_v28, %v1536_v56  ;;  %v1950_v22 = vadd.f32 %v265_v44, %v2734_v47  ;;  %v2742_v29 = vld [vmem:[#allocation49_spill] sm:$0xff] }
  0xb3   :  { %2733 = vst [vmem:[#allocation40_spill] sm:$0xff] %v1943_v10  ;;  %v1953_v38 = vadd.f32 %v266_v2, %v2736_v30  ;;  %v1956_v39 = vadd.f32 %v267_v40, %v2738_v36  ;;  %v1959_v52 = vadd.f32 %v289_v37, %v2740_v41  ;;  %v665_v10 = vmul.f32 %v1541_v58, %v238_v28  ;;  %v2746_v37 = vld [vmem:[#allocation51_spill] sm:$0xff]  ;;  %v2748_v36 = vld [vmem:[#allocation52_spill] sm:$0xff] }
  0xb4   :  { %2735 = vst [vmem:[#allocation45_spill] sm:$0xff] %v1950_v22  ;;  %v666_v16 = vmul.f32 %v1543_v59, %v238_v28  ;;  %v1964_v12 = vadd.f32 %v290_v1, %v2742_v29  ;;  %v1967_v35 = vadd.f32 %v291_v21, %v2744_v23  ;;  %v667_v44 = vmul.f32 %v1545_v60, %v238_v28  ;;  %v2752_v1 = vld [vmem:[#allocation54_spill] sm:$0xff] }
  0xb5   :  { %2737 = vst [vmem:[#allocation46_spill] sm:$0xff] %v1953_v38  ;;  %2739 = vst [vmem:[#allocation47_spill] sm:$0xff] %v1956_v39  ;;  %v689_v2 = vmul.f32 %v1547_v61, %v238_v28  ;;  %v690_v30 = vmul.f32 %v1549_v62, %v238_v28  ;;  %v691_v40 = vmul.f32 %v1551_v63, %v238_v28  ;;  %v2754_v39 = vld [vmem:[#allocation55_spill] sm:$0xff]  ;;  %v2756_v28 = vld [vmem:[#allocation56_spill] sm:$0xff] }
  0xb6   :  { %2741 = vst [vmem:[#allocation48_spill] sm:$0xff] %v1959_v52  ;;  %2743 = vst [vmem:[#allocation49_spill] sm:$0xff] %v1964_v12  ;;  %v1974_v47 = vadd.f32 %v665_v10, %v2746_v37  ;;  %v1977_v41 = vadd.f32 %v666_v16, %v2748_v36  ;;  %v2750_v52 = vld [vmem:[#allocation53_spill] sm:$0xff]  ;;  %v262_v21 = vmul.f32 %v233_v49, %v1523_v50  ;;  %v386_v12 = vpop.permute.xlu1 %385  ;;  %v2759_v36 = vld [vmem:[#allocation58_spill] sm:$0xff] }
  0xb7   :  { %2745 = vst [vmem:[#allocation50_spill] sm:$0xff] %v1967_v35  ;;  %v1980_v29 = vadd.f32 %v667_v44, %v2750_v52  ;;  %v1983_v23 = vadd.f32 %v689_v2, %v2752_v1  ;;  %v263_v35 = vmul.f32 %v233_v49, %v1525_v51  ;;  %v1988_v38 = vadd.f32 %v690_v30, %v2754_v39  ;;  %v1995_v52 = vpop.permute.xlu0 %242  ;;  %v2761_v51 = vld [vmem:[#allocation59_spill] sm:$0xff]  ;;  %v2763_v39 = vld [vmem:[#allocation60_spill] sm:$0xff] }
  0xb8   :  { %2747 = vst [vmem:[#allocation51_spill] sm:$0xff] %v1974_v47  ;;  %2749 = vst [vmem:[#allocation52_spill] sm:$0xff] %v1977_v41  ;;  %v1991_v10 = vadd.f32 %v691_v40, %v2756_v28  ;;  %v264_v16 = vmul.f32 %v233_v49, %v1530_v53  ;;  %v286_v37 = vmul.f32 %v233_v49, %v1532_v54  ;;  %v2765_v40 = vld [vmem:[#allocation61_spill] sm:$0xff]  ;;  %v2767_v53 = vld [vmem:[#allocation62_spill] sm:$0xff] }
  0xb9   :  { %2751 = vst [vmem:[#allocation53_spill] sm:$0xff] %v1980_v29  ;;  %2753 = vst [vmem:[#allocation54_spill] sm:$0xff] %v1983_v23  ;;  %v287_v44 = vmul.f32 %v233_v49, %v1534_v55  ;;  %v288_v2 = vmul.f32 %v233_v49, %v1536_v56  ;;  %v2000_v1 = vadd.f32 %v262_v21, %v2759_v36  ;;  %v2769_v56 = vld [vmem:[#allocation63_spill] sm:$0xff] }
  0xba   :  { %2755 = vst [vmem:[#allocation55_spill] sm:$0xff] %v1988_v38  ;;  %2757 = vst [vmem:[#allocation56_spill] sm:$0xff] %v1991_v10  ;;  %v2003_v50 = vadd.f32 %v263_v35, %v2761_v51  ;;  %v2006_v30 = vadd.f32 %v264_v16, %v2763_v39  ;;  %v2009_v28 = vadd.f32 %v286_v37, %v2765_v40  ;;  %v2771_v37 = vld [vmem:[#allocation64_spill] sm:$0xff]  ;;  %v2773_v39 = vld [vmem:[#allocation65_spill] sm:$0xff] }
  0xbb   :  { %2758 = vst [vmem:[#allocation83_spill] sm:$0xff] %v1995_v52  ;;  %2760 = vst [vmem:[#allocation58_spill] sm:$0xff] %v2000_v1  ;;  %v662_v54 = vmul.f32 %v1541_v58, %v233_v49  ;;  %v663_v52 = vmul.f32 %v1543_v59, %v233_v49  ;;  %v2014_v55 = vadd.f32 %v287_v44, %v2767_v53  ;;  %v2777_v44 = vld [vmem:[#allocation67_spill] sm:$0xff] }
  0xbc   :  { %2762 = vst [vmem:[#allocation59_spill] sm:$0xff] %v2003_v50  ;;  %2764 = vst [vmem:[#allocation60_spill] sm:$0xff] %v2006_v30  ;;  %v2017_v10 = vadd.f32 %v288_v2, %v2769_v56  ;;  %v664_v21 = vmul.f32 %v1545_v60, %v233_v49  ;;  %v686_v51 = vmul.f32 %v1547_v61, %v233_v49 }
  0xbd   :  { %2766 = vst [vmem:[#allocation61_spill] sm:$0xff] %v2009_v28  ;;  %2768 = vst [vmem:[#allocation62_spill] sm:$0xff] %v2014_v55  ;;  %v687_v35 = vmul.f32 %v1549_v62, %v233_v49  ;;  %v688_v16 = vmul.f32 %v1551_v63, %v233_v49  ;;  %v2024_v36 = vadd.f32 %v662_v54, %v2771_v37  ;;  %v2775_v28 = vld [vmem:[#allocation66_spill] sm:$0xff]  ;;  %v396_v55 = vpop.permute.xlu1 %395  ;;  %v2779_v49 = vld [vmem:[#allocation68_spill] sm:$0xff] }
  0xbe   :  { %2770 = vst [vmem:[#allocation63_spill] sm:$0xff] %v2017_v10  ;;  %v2027_v40 = vadd.f32 %v663_v52, %v2773_v39  ;;  %v2030_v53 = vadd.f32 %v664_v21, %v2775_v28  ;;  %v2033_v56 = vadd.f32 %v686_v51, %v2777_v44  ;;  %v2036_v2 = vmul.f32 %v386_v12, %v1541_v58  ;;  %v2781_v54 = vld [vmem:[#allocation69_spill] sm:$0xff]  ;;  %v381_v21 = vpop.permute.xlu0 %380  ;;  %v2783_v44 = vld [vmem:[#allocation23_spill] sm:$0xff] }
  0xbf   :  { %2772 = vst [vmem:[#allocation64_spill] sm:$0xff] %v2024_v36  ;;  %v2039_v10 = vmul.f32 %v386_v12, %v1543_v59  ;;  %v2042_v30 = vadd.f32 %v687_v35, %v2779_v49  ;;  %v2045_v37 = vadd.f32 %v688_v16, %v2781_v54  ;;  %v2048_v52 = vmul.f32 %v386_v12, %v1545_v60  ;;  %v2784_v35 = vld [vmem:[#allocation24_spill] sm:$0xff]  ;;  %v2785_v16 = vld [vmem:[#allocation25_spill] sm:$0xff] }
  0xc0   :  { %2774 = vst [vmem:[#allocation65_spill] sm:$0xff] %v2027_v40  ;;  %2776 = vst [vmem:[#allocation66_spill] sm:$0xff] %v2030_v53  ;;  %v2051_v28 = vmul.f32 %v386_v12, %v1547_v61  ;;  %v2054_v51 = vmul.f32 %v386_v12, %v1549_v62  ;;  %v2057_v39 = vmul.f32 %v386_v12, %v1551_v63  ;;  %v2787_v53 = vld [vmem:[#allocation27_spill] sm:$0xff]  ;;  %v2788_v36 = vld [vmem:[#allocation28_spill] sm:$0xff] }
  0xc1   :  { %2778 = vst [vmem:[#allocation67_spill] sm:$0xff] %v2033_v56  ;;  %2780 = vst [vmem:[#allocation68_spill] sm:$0xff] %v2042_v30  ;;  %v2060_v56 = vmul.f32 %v2783_v44, %v386_v12  ;;  %v2063_v49 = vmul.f32 %v2784_v35, %v386_v12  ;;  %v2066_v54 = vmul.f32 %v2785_v16, %v386_v12  ;;  %v406_v11 = vpop.permute.xlu1 %405 }
  0xc2   :  { %2782 = vst [vmem:[#allocation69_spill] sm:$0xff] %v2045_v37  ;;  %v2786_v37 = vld [vmem:[#allocation26_spill] sm:$0xff]  ;;  %v2072_v40 = vmul.f32 %v2787_v53, %v386_v12  ;;  %v2075_v50 = vmul.f32 %v2788_v36, %v386_v12  ;;  %v2078_v1 = vmul.f32 %v381_v21, %v1541_v58  ;;  %v2081_v38 = vmul.f32 %v381_v21, %v1543_v59 }
  0xc3   :  { %v2069_v30 = vmul.f32 %v2786_v37, %v386_v12  ;;  %v2084_v23 = vmul.f32 %v381_v21, %v1545_v60  ;;  %v2087_v29 = vmul.f32 %v381_v21, %v1547_v61  ;;  %v2090_v41 = vmul.f32 %v381_v21, %v1549_v62 }
  0xc4   :  { %v2093_v47 = vmul.f32 %v381_v21, %v1551_v63  ;;  %v2096_v12 = vmul.f32 %v2783_v44, %v381_v21  ;;  %v2099_v22 = vmul.f32 %v2784_v35, %v381_v21  ;;  %v2102_v34 = vmul.f32 %v2785_v16, %v381_v21 }
  0xc5   :  { %v2105_v19 = vmul.f32 %v2786_v37, %v381_v21  ;;  %v2108_v33 = vmul.f32 %v2787_v53, %v381_v21  ;;  %v2111_v32 = vmul.f32 %v2788_v36, %v381_v21  ;;  %v2114_v31 = vmul.f32 %v396_v55, %v1541_v58 }
  0xc6   :  { %2789 = vst [vmem:[#allocation84_spill] sm:$0xff] %v2102_v34  ;;  %v2117_v25 = vmul.f32 %v396_v55, %v1543_v59  ;;  %v2120_v43 = vmul.f32 %v396_v55, %v1545_v60  ;;  %v2123_v27 = vmul.f32 %v396_v55, %v1547_v61  ;;  %v2126_v34 = vmul.f32 %v396_v55, %v1549_v62 }
  0xc7   :  { %2790 = vst [vmem:[#allocation85_spill] sm:$0xff] %v2105_v19  ;;  %2791 = vst [vmem:[#allocation86_spill] sm:$0xff] %v2111_v32  ;;  %v391_v19 = vpop.permute.xlu0 %390  ;;  %v2129_v21 = vmul.f32 %v396_v55, %v1551_v63  ;;  %v2132_v32 = vmul.f32 %v2783_v44, %v396_v55 }
  0xc8   :  { %2792 = vst [vmem:[#allocation87_spill] sm:$0xff] %v2114_v31  ;;  %2793 = vst [vmem:[#allocation88_spill] sm:$0xff] %v2117_v25  ;;  %v2135_v31 = vmul.f32 %v2784_v35, %v396_v55  ;;  %v2138_v25 = vmul.f32 %v2785_v16, %v396_v55 }
  0xc9   :  { %2794 = vst [vmem:[#allocation89_spill] sm:$0xff] %v2120_v43  ;;  %2795 = vst [vmem:[#allocation90_spill] sm:$0xff] %v2123_v27  ;;  %v2141_v43 = vmul.f32 %v2786_v37, %v396_v55  ;;  %v2144_v27 = vmul.f32 %v2787_v53, %v396_v55 }
  0xca   :  { %2796 = vst [vmem:[#allocation91_spill] sm:$0xff] %v2126_v34  ;;  %2797 = vst [vmem:[#allocation92_spill] sm:$0xff] %v2129_v21  ;;  %v2147_v34 = vmul.f32 %v2788_v36, %v396_v55  ;;  %v2150_v21 = vmul.f32 %v391_v19, %v1541_v58  ;;  %v2168_v55 = vmul.f32 %v2783_v44, %v391_v19 }
  0xcb   :  { %2798 = vst [vmem:[#allocation93_spill] sm:$0xff] %v2132_v32  ;;  %2799 = vst [vmem:[#allocation94_spill] sm:$0xff] %v2135_v31  ;;  %v2153_v32 = vmul.f32 %v391_v19, %v1543_v59  ;;  %v2156_v31 = vmul.f32 %v391_v19, %v1545_v60 }
  0xcc   :  { %2800 = vst [vmem:[#allocation95_spill] sm:$0xff] %v2138_v25  ;;  %2801 = vst [vmem:[#allocation96_spill] sm:$0xff] %v2141_v43  ;;  %v2159_v25 = vmul.f32 %v391_v19, %v1547_v61  ;;  %v2162_v43 = vmul.f32 %v391_v19, %v1549_v62 }
  0xcd   :  { %2802 = vst [vmem:[#allocation97_spill] sm:$0xff] %v2144_v27  ;;  %2803 = vst [vmem:[#allocation98_spill] sm:$0xff] %v2147_v34  ;;  %v2165_v27 = vmul.f32 %v391_v19, %v1551_v63  ;;  %v2185_v34 = vpop.permute.xlu1 %415 }
  0xce   :  { %2804 = vst [vmem:[#allocation99_spill] sm:$0xff] %v2150_v21  ;;  %2805 = vst [vmem:[#allocation100_spill] sm:$0xff] %v2153_v32  ;;  %v2171_v21 = vmul.f32 %v2784_v35, %v391_v19  ;;  %v2174_v32 = vmul.f32 %v2785_v16, %v391_v19 }
  0xcf   :  { %2806 = vst [vmem:[#allocation101_spill] sm:$0xff] %v2156_v31  ;;  %2807 = vst [vmem:[#allocation102_spill] sm:$0xff] %v2159_v25  ;;  %v2177_v31 = vmul.f32 %v2786_v37, %v391_v19  ;;  %v2180_v25 = vmul.f32 %v2787_v53, %v391_v19 }
  0xd0   :  { %2808 = vst [vmem:[#allocation103_spill] sm:$0xff] %v2162_v43  ;;  %2809 = vst [vmem:[#allocation104_spill] sm:$0xff] %v2165_v27  ;;  %v2183_v43 = vmul.f32 %v2788_v36, %v391_v19  ;;  %v2188_v27 = vmul.f32 %v406_v11, %v1541_v58  ;;  %v2203_v19 = vmul.f32 %v406_v11, %v1551_v63 }
  0xd1   :  { %2810 = vst [vmem:[#allocation105_spill] sm:$0xff] %v2168_v55  ;;  %2811 = vst [vmem:[#allocation106_spill] sm:$0xff] %v2171_v21  ;;  %v2191_v55 = vmul.f32 %v406_v11, %v1543_v59  ;;  %v2194_v21 = vmul.f32 %v406_v11, %v1545_v60 }
  0xd2   :  { %2812 = vst [vmem:[#allocation107_spill] sm:$0xff] %v2174_v32  ;;  %2813 = vst [vmem:[#allocation108_spill] sm:$0xff] %v2177_v31  ;;  %v2197_v32 = vmul.f32 %v406_v11, %v1547_v61  ;;  %v401_v31 = vpop.permute.xlu0 %400 }
  0xd3   :  { %2814 = vst [vmem:[#allocation109_spill] sm:$0xff] %v2180_v25  ;;  %2815 = vst [vmem:[#allocation110_spill] sm:$0xff] %v2185_v34  ;;  %v2200_v25 = vmul.f32 %v406_v11, %v1549_v62  ;;  %v2206_v34 = vmul.f32 %v2783_v44, %v406_v11 }
  0xd4   :  { %2816 = vst [vmem:[#allocation111_spill] sm:$0xff] %v2188_v27  ;;  %2817 = vst [vmem:[#allocation112_spill] sm:$0xff] %v2191_v55  ;;  %v2209_v27 = vmul.f32 %v2784_v35, %v406_v11  ;;  %v2212_v55 = vmul.f32 %v2785_v16, %v406_v11 }
  0xd5   :  { %2818 = vst [vmem:[#allocation113_spill] sm:$0xff] %v2194_v21  ;;  %2819 = vst [vmem:[#allocation114_spill] sm:$0xff] %v2197_v32  ;;  %v2215_v21 = vmul.f32 %v2786_v37, %v406_v11  ;;  %v2218_v32 = vmul.f32 %v2787_v53, %v406_v11 }
  0xd6   :  { %2820 = vst [vmem:[#allocation115_spill] sm:$0xff] %v2200_v25  ;;  %2821 = vst [vmem:[#allocation116_spill] sm:$0xff] %v2203_v19  ;;  %v2221_v25 = vmul.f32 %v2788_v36, %v406_v11  ;;  %v2224_v19 = vmul.f32 %v401_v31, %v1541_v58  ;;  %v2242_v11 = vmul.f32 %v2783_v44, %v401_v31 }
  0xd7   :  { %2822 = vst [vmem:[#allocation117_spill] sm:$0xff] %v2206_v34  ;;  %2823 = vst [vmem:[#allocation118_spill] sm:$0xff] %v2209_v27  ;;  %v2227_v34 = vmul.f32 %v401_v31, %v1543_v59  ;;  %v2230_v27 = vmul.f32 %v401_v31, %v1545_v60  ;;  %v2245_v58 = vmul.f32 %v2784_v35, %v401_v31 }
  0xd8   :  { %2824 = vst [vmem:[#allocation119_spill] sm:$0xff] %v2212_v55  ;;  %2825 = vst [vmem:[#allocation120_spill] sm:$0xff] %v2215_v21  ;;  %v2233_v55 = vmul.f32 %v401_v31, %v1547_v61  ;;  %v2236_v21 = vmul.f32 %v401_v31, %v1549_v62  ;;  %v2248_v59 = vmul.f32 %v2785_v16, %v401_v31 }
  0xd9   :  { %2826 = vst [vmem:[#allocation121_spill] sm:$0xff] %v2218_v32  ;;  %v2239_v32 = vmul.f32 %v401_v31, %v1551_v63  ;;  %v2251_v60 = vmul.f32 %v2786_v37, %v401_v31  ;;  %v2254_v61 = vmul.f32 %v2787_v53, %v401_v31  ;;  %v2257_v62 = vmul.f32 %v2788_v36, %v401_v31  ;;  %v522_v63 = vpop.permute.xlu1 %521 }
  0xda   :  { %v469_v44 = vadd.f32 %v2036_v2, %v1769_v45  ;;  %v470_v35 = vadd.f32 %v2039_v10, %v1771_v3  ;;  %v471_v16 = vadd.f32 %v2048_v52, %v1773_v48  ;;  %v493_v37 = vadd.f32 %v2051_v28, %v1775_v14 }
  0xdb   :  { %2827 = vst [vmem:[#allocation122_spill] sm:$0xff] %v2254_v61  ;;  %2828 = vst [vmem:[#allocation123_spill] sm:$0xff] %v2257_v62  ;;  %v494_v53 = vadd.f32 %v2054_v51, %v1777_v8  ;;  %v495_v31 = vadd.f32 %v2057_v39, %v1779_v9  ;;  %v829_v36 = vadd.f32 %v2060_v56, %v1785_v7  ;;  %v2279_v9 = vpop.permute.xlu0 %410 }
  0xdc   :  { %v830_v45 = vadd.f32 %v2063_v49, %v1787_v6  ;;  %v557_v2 = vadd.f32 %v522_v63, %v469_v44  ;;  %v558_v3 = vadd.f32 %v522_v63, %v470_v35  ;;  %v559_v10 = vadd.f32 %v522_v63, %v471_v16  ;;  %2829 = vst [vmem:[#allocation124_spill] sm:$0xff] %v2279_v9 }
  0xdd   :  { %v581_v62 = vadd.f32 %v522_v63, %v493_v37  ;;  %v582_v48 = vadd.f32 %v522_v63, %v494_v53  ;;  %v583_v52 = vadd.f32 %v522_v63, %v495_v31  ;;  %v831_v14 = vadd.f32 %v2066_v54, %v1789_v5 }
  0xde   :  { %v853_v8 = vadd.f32 %v2069_v30, %v1791_v42  ;;  %v854_v7 = vadd.f32 %v2072_v40, %v1795_v0  ;;  %v855_v6 = vadd.f32 %v2075_v50, %v1797_v4  ;;  %v877_v56 = vadd.f32 %v829_v36, %v522_v63 }
  0xdf   :  { %v878_v28 = vadd.f32 %v830_v45, %v522_v63  ;;  %v879_v37 = vadd.f32 %v831_v14, %v522_v63  ;;  %v925_v53 = vmax.f32 %v557_v2, 0.0  ;;  %v926_v39 = vmax.f32 %v558_v3, 0.0  ;;  %v517_v3 = vpop.permute.xlu0 %516 }
  0xe0   :  { %v901_v51 = vadd.f32 %v853_v8, %v522_v63  ;;  %v902_v44 = vadd.f32 %v854_v7, %v522_v63  ;;  %v903_v35 = vadd.f32 %v855_v6, %v522_v63  ;;  %v927_v5 = vmax.f32 %v559_v10, 0.0 }
  0xe1   :  { %v949_v49 = vmax.f32 %v581_v62, 0.0  ;;  %v950_v16 = vmax.f32 %v582_v48, 0.0  ;;  %v951_v42 = vmax.f32 %v583_v52, 0.0  ;;  %v973_v30 = vmax.f32 %v877_v56, 0.0  ;;  %v2833_v56 = vld [vmem:[#allocation71_spill] sm:$0xff] }
  0xe2   :  { %v974_v54 = vmax.f32 %v878_v28, 0.0  ;;  %v975_v31 = vmax.f32 %v879_v37, 0.0  ;;  %v997_v9 = vmax.f32 %v901_v51, 0.0  ;;  %v998_v0 = vmax.f32 %v902_v44, 0.0  ;;  %v2834_v37 = vld [vmem:[#allocation72_spill] sm:$0xff]  ;;  %v2835_v51 = vld [vmem:[#allocation86_spill] sm:$0xff] }
  0xe3   :  { %v999_v40 = vmax.f32 %v903_v35, 0.0  ;;  %v1021_v61 = vmax.f32 %v925_v53, %v973_v30  ;;  %v466_v4 = vadd.f32 %v2078_v1, %v1804_v13  ;;  %v467_v36 = vadd.f32 %v2081_v38, %v1807_v17 }
  0xe4   :  { %v1022_v50 = vmax.f32 %v926_v39, %v974_v54  ;;  %v1023_v45 = vmax.f32 %v927_v5, %v975_v31  ;;  %v1045_v63 = vmax.f32 %v949_v49, %v997_v9  ;;  %v1046_v2 = vmax.f32 %v950_v16, %v998_v0 }
  0xe5   :  { %v1047_v62 = vmax.f32 %v951_v42, %v999_v40  ;;  %v468_v48 = vadd.f32 %v2084_v23, %v1810_v18  ;;  %v490_v52 = vadd.f32 %v2087_v29, %v1813_v15  ;;  %v491_v14 = vadd.f32 %v2090_v41, %v1818_v57  ;;  %v2831_v29 = vld [vmem:[#allocation70_spill] sm:$0xff]  ;;  %v2832_v23 = vld [vmem:[#allocation85_spill] sm:$0xff] }
  0xe6   :  { %v1315_v10 = vpack.c.bf16 %v1022_v50, %v1021_v61  ;;  %v1316_v8 = vpack.c.bf16 %v1023_v45, %v1023_v45  ;;  %v1331_v13 = vpack.c.bf16 %v1046_v2, %v1045_v63  ;;  %v492_v17 = vadd.f32 %v2093_v47, %v1821_v20  ;;  %v2830_v20 = vld [vmem:[#allocation84_spill] sm:$0xff]  ;;  %v2836_v50 = vld [vmem:[#allocation73_spill] sm:$0xff]  ;;  %v2838_v45 = vld [vmem:[#allocation74_spill] sm:$0xff] }
  0xe7   :  { %v1332_v1 = vpack.c.bf16 %v1047_v62, %v1047_v62  ;;  %v554_v38 = vadd.f32 %v517_v3, %v466_v4  ;;  %v555_v9 = vadd.f32 %v517_v3, %v467_v36  ;;  %v556_v7 = vadd.f32 %v517_v3, %v468_v48  ;;  %v2837_v4 = vld [vmem:[#allocation87_spill] sm:$0xff]  ;;  %v2839_v63 = vld [vmem:[#allocation88_spill] sm:$0xff] }
  0xe8   :  { %1229 = vst [vmem:[#allocation2 + $0xc] sm:$0xff] %v1315_v10  ;;  %v578_v61 = vadd.f32 %v517_v3, %v490_v52  ;;  %1230 = vst.msk [vmem:[#allocation2 + $0x14] sm:$0xf] %vm1227_vm0, %v1316_v8  ;;  %v579_v18 = vadd.f32 %v517_v3, %v491_v14  ;;  %v580_v15 = vadd.f32 %v517_v3, %v492_v17  ;;  %v532_v52 = vpop.permute.xlu1 %531 }
  0xe9   :  { %1245 = vst [vmem:[#allocation2 + $0x6c] sm:$0xff] %v1331_v13  ;;  %1246 = vst.msk [vmem:[#allocation2 + $0x74] sm:$0xf] %vm1227_vm0, %v1332_v1  ;;  %v826_v57 = vadd.f32 %v2096_v12, %v1828_v24  ;;  %v827_v41 = vadd.f32 %v2099_v22, %v1831_v46  ;;  %v828_v47 = vadd.f32 %v2830_v20, %v1834_v26  ;;  %v922_v35 = vmax.f32 %v554_v38, 0.0  ;;  %v2840_v13 = vld [vmem:[#allocation75_spill] sm:$0xff]  ;;  %v2841_v1 = vld [vmem:[#allocation89_spill] sm:$0xff] }
  0xea   :  { %v850_v6 = vadd.f32 %v2832_v23, %v2831_v29  ;;  %v851_v28 = vadd.f32 %v2108_v33, %v2833_v56  ;;  %v852_v53 = vadd.f32 %v2835_v51, %v2834_v37  ;;  %v923_v5 = vmax.f32 %v555_v9, 0.0  ;;  %v2842_v38 = vld [vmem:[#allocation76_spill] sm:$0xff]  ;;  %v2843_v9 = vld [vmem:[#allocation90_spill] sm:$0xff] }
  0xeb   :  { %v874_v39 = vadd.f32 %v826_v57, %v517_v3  ;;  %v875_v44 = vadd.f32 %v827_v41, %v517_v3  ;;  %v876_v24 = vadd.f32 %v828_v47, %v517_v3  ;;  %v924_v22 = vmax.f32 %v556_v7, 0.0  ;;  %v2845_v57 = vld [vmem:[#allocation91_spill] sm:$0xff]  ;;  %v2846_v20 = vld [vmem:[#allocation78_spill] sm:$0xff]  ;;  %v2847_v47 = vld [vmem:[#allocation92_spill] sm:$0xff] }
  0xec   :  { %v898_v12 = vadd.f32 %v850_v6, %v517_v3  ;;  %v899_v49 = vadd.f32 %v851_v28, %v517_v3  ;;  %v900_v46 = vadd.f32 %v852_v53, %v517_v3  ;;  %v946_v16 = vmax.f32 %v578_v61, 0.0 }
  0xed   :  { %v947_v26 = vmax.f32 %v579_v18, 0.0  ;;  %v948_v42 = vmax.f32 %v580_v15, 0.0  ;;  %v970_v30 = vmax.f32 %v874_v39, 0.0  ;;  %v971_v54 = vmax.f32 %v875_v44, 0.0  ;;  %v2844_v15 = vld [vmem:[#allocation77_spill] sm:$0xff]  ;;  %v2848_v44 = vld [vmem:[#allocation79_spill] sm:$0xff] }
  0xee   :  { %v972_v31 = vmax.f32 %v876_v24, 0.0  ;;  %v994_v0 = vmax.f32 %v898_v12, 0.0  ;;  %v995_v33 = vmax.f32 %v899_v49, 0.0  ;;  %v996_v40 = vmax.f32 %v900_v46, 0.0  ;;  %v2850_v24 = vld [vmem:[#allocation80_spill] sm:$0xff]  ;;  %v2851_v12 = vld [vmem:[#allocation94_spill] sm:$0xff] }
  0xef   :  { %v475_v36 = vadd.f32 %v2837_v4, %v2836_v50  ;;  %v476_v2 = vadd.f32 %v2839_v63, %v2838_v45  ;;  %v1018_v62 = vmax.f32 %v922_v35, %v970_v30  ;;  %v1019_v10 = vmax.f32 %v923_v5, %v971_v54  ;;  %v2849_v35 = vld [vmem:[#allocation93_spill] sm:$0xff]  ;;  %v2856_v54 = vld [vmem:[#allocation42_spill] sm:$0xff] }
  0xf0   :  { %v1020_v48 = vmax.f32 %v924_v22, %v972_v31  ;;  %v1042_v3 = vmax.f32 %v946_v16, %v994_v0  ;;  %v1043_v14 = vmax.f32 %v947_v26, %v995_v33  ;;  %v1044_v8 = vmax.f32 %v948_v42, %v996_v40  ;;  %v2852_v46 = vld [vmem:[#allocation81_spill] sm:$0xff]  ;;  %v2853_v22 = vld [vmem:[#allocation95_spill] sm:$0xff]  ;;  %v2855_v42 = vld [vmem:[#allocation96_spill] sm:$0xff] }
  0xf1   :  { %v477_v17 = vadd.f32 %v2841_v1, %v2840_v13  ;;  %v499_v7 = vadd.f32 %v2843_v9, %v2842_v38  ;;  %v1313_v61 = vpack.c.bf16 %v1019_v10, %v1018_v62  ;;  %v500_v41 = vadd.f32 %v2845_v57, %v2844_v15  ;;  %v2854_v26 = vld [vmem:[#allocation41_spill] sm:$0xff]  ;;  %v2858_v33 = vld [vmem:[#allocation43_spill] sm:$0xff]  ;;  %v2859_v40 = vld [vmem:[#allocation98_spill] sm:$0xff] }
  0xf2   :  { %v1314_v18 = vpack.c.bf16 %v1020_v48, %v1020_v48  ;;  %v501_v29 = vadd.f32 %v2847_v47, %v2846_v20  ;;  %v1329_v23 = vpack.c.bf16 %v1043_v14, %v1042_v3  ;;  %v1330_v6 = vpack.c.bf16 %v1044_v8, %v1044_v8  ;;  %v2857_v31 = vld [vmem:[#allocation97_spill] sm:$0xff]  ;;  %v2862_v47 = vld [vmem:[#allocation30_spill] sm:$0xff] }
  0xf3   :  { %v563_v56 = vadd.f32 %v532_v52, %v475_v36  ;;  %v564_v28 = vadd.f32 %v532_v52, %v476_v2  ;;  %1226 = vst [vmem:[#allocation2] sm:$0xff] %v1313_v61  ;;  %v565_v37 = vadd.f32 %v532_v52, %v477_v17  ;;  %v587_v51 = vadd.f32 %v532_v52, %v499_v7  ;;  %v2860_v57 = vld [vmem:[#allocation29_spill] sm:$0xff] }
  0xf4   :  { %1228 = vst.msk [vmem:[#allocation2 + $0x8] sm:$0xf] %vm1227_vm0, %v1314_v18  ;;  %v588_v53 = vadd.f32 %v532_v52, %v500_v41  ;;  %v589_v39 = vadd.f32 %v532_v52, %v501_v29  ;;  %1243 = vst [vmem:[#allocation2 + $0x60] sm:$0xff] %v1329_v23  ;;  %v835_v5 = vadd.f32 %v2849_v35, %v2848_v44  ;;  %v2861_v41 = vld [vmem:[#allocation99_spill] sm:$0xff]  ;;  %v2863_v29 = vld [vmem:[#allocation100_spill] sm:$0xff] }
  0xf5   :  { %1244 = vst.msk [vmem:[#allocation2 + $0x68] sm:$0xf] %vm1227_vm0, %v1330_v6  ;;  %v836_v49 = vadd.f32 %v2851_v12, %v2850_v24  ;;  %v837_v16 = vadd.f32 %v2853_v22, %v2852_v46  ;;  %v859_v30 = vadd.f32 %v2855_v42, %v2854_v26  ;;  %v860_v0 = vadd.f32 %v2857_v31, %v2856_v54  ;;  %v2866_v35 = vld [vmem:[#allocation32_spill] sm:$0xff]  ;;  %v2868_v12 = vld [vmem:[#allocation33_spill] sm:$0xff]  ;;  %v2870_v42 = vld [vmem:[#allocation34_spill] sm:$0xff] }
  0xf6   :  { %v861_v50 = vadd.f32 %v2859_v40, %v2858_v33  ;;  %v931_v4 = vmax.f32 %v563_v56, 0.0  ;;  %v932_v36 = vmax.f32 %v564_v28, 0.0  ;;  %v883_v45 = vadd.f32 %v835_v5, %v532_v52  ;;  %v2867_v5 = vld [vmem:[#allocation102_spill] sm:$0xff] }
  0xf7   :  { %v884_v63 = vadd.f32 %v836_v49, %v532_v52  ;;  %v885_v2 = vadd.f32 %v837_v16, %v532_v52  ;;  %v907_v62 = vadd.f32 %v859_v30, %v532_v52  ;;  %v908_v10 = vadd.f32 %v860_v0, %v532_v52  ;;  %v2869_v49 = vld [vmem:[#allocation103_spill] sm:$0xff]  ;;  %v2871_v30 = vld [vmem:[#allocation104_spill] sm:$0xff] }
  0xf8   :  { %v909_v48 = vadd.f32 %v861_v50, %v532_v52  ;;  %v933_v3 = vmax.f32 %v565_v37, 0.0  ;;  %v955_v14 = vmax.f32 %v587_v51, 0.0  ;;  %v956_v8 = vmax.f32 %v588_v53, 0.0  ;;  %v527_v37 = vpop.permute.xlu0 %526  ;;  %v2864_v53 = vld [vmem:[#allocation31_spill] sm:$0xff] }
  0xf9   :  { %v957_v13 = vmax.f32 %v589_v39, 0.0  ;;  %v979_v1 = vmax.f32 %v883_v45, 0.0  ;;  %v980_v17 = vmax.f32 %v884_v63, 0.0  ;;  %v981_v38 = vmax.f32 %v885_v2, 0.0  ;;  %v2865_v39 = vld [vmem:[#allocation101_spill] sm:$0xff]  ;;  %v2874_v2 = vld [vmem:[#allocation36_spill] sm:$0xff] }
  0xfa   :  { %v1003_v9 = vmax.f32 %v907_v62, 0.0  ;;  %v1004_v7 = vmax.f32 %v908_v10, 0.0  ;;  %v1005_v61 = vmax.f32 %v909_v48, 0.0  ;;  %v472_v20 = vadd.f32 %v2861_v41, %v2860_v57  ;;  %v2873_v45 = vld [vmem:[#allocation105_spill] sm:$0xff]  ;;  %v2875_v62 = vld [vmem:[#allocation106_spill] sm:$0xff] }
  0xfb   :  { %v1027_v18 = vmax.f32 %v931_v4, %v979_v1  ;;  %v1028_v15 = vmax.f32 %v932_v36, %v980_v17  ;;  %v473_v23 = vadd.f32 %v2863_v29, %v2862_v47  ;;  %v1029_v6 = vmax.f32 %v933_v3, %v981_v38  ;;  %v2872_v36 = vld [vmem:[#allocation35_spill] sm:$0xff]  ;;  %v2876_v48 = vld [vmem:[#allocation37_spill] sm:$0xff] }
  0xfc   :  { %v1051_v52 = vmax.f32 %v955_v14, %v1003_v9  ;;  %v1052_v56 = vmax.f32 %v956_v8, %v1004_v7  ;;  %v1053_v28 = vmax.f32 %v957_v13, %v1005_v61  ;;  %v474_v44 = vadd.f32 %v2865_v39, %v2864_v53  ;;  %v2877_v3 = vld [vmem:[#allocation107_spill] sm:$0xff]  ;;  %v2878_v8 = vld [vmem:[#allocation38_spill] sm:$0xff]  ;;  %v2879_v13 = vld [vmem:[#allocation108_spill] sm:$0xff] }
  0xfd   :  { %v1319_v51 = vpack.c.bf16 %v1028_v15, %v1027_v18  ;;  %v496_v24 = vadd.f32 %v2867_v5, %v2866_v35  ;;  %v497_v46 = vadd.f32 %v2869_v49, %v2868_v12  ;;  %v1320_v22 = vpack.c.bf16 %v1029_v6, %v1029_v6  ;;  %v2880_v17 = vld [vmem:[#allocation39_spill] sm:$0xff]  ;;  %v2881_v38 = vld [vmem:[#allocation109_spill] sm:$0xff]  ;;  %v2882_v7 = vld [vmem:[#allocation40_spill] sm:$0xff] }
  0xfe   :  { %v1335_v16 = vpack.c.bf16 %v1052_v56, %v1051_v52  ;;  %v1336_v26 = vpack.c.bf16 %v1053_v28, %v1053_v28  ;;  %v498_v54 = vadd.f32 %v2871_v30, %v2870_v42  ;;  %v560_v31 = vadd.f32 %v527_v37, %v472_v20  ;;  %v2885_v49 = vld [vmem:[#allocation46_spill] sm:$0xff]  ;;  %v542_v30 = vpop.permute.xlu1 %541 }
  0xff   :  { %1233 = vst [vmem:[#allocation2 + $0x24] sm:$0xff] %v1319_v51  ;;  %v561_v0 = vadd.f32 %v527_v37, %v473_v23  ;;  %v562_v33 = vadd.f32 %v527_v37, %v474_v44  ;;  %v584_v40 = vadd.f32 %v527_v37, %v496_v24  ;;  %1234 = vst.msk [vmem:[#allocation2 + $0x2c] sm:$0xf] %vm1227_vm0, %v1320_v22  ;;  %v2883_v24 = vld [vmem:[#allocation45_spill] sm:$0xff] }
 0x100   :  { %1249 = vst [vmem:[#allocation2 + $0x84] sm:$0xff] %v1335_v16  ;;  %1250 = vst.msk [vmem:[#allocation2 + $0x8c] sm:$0xf] %vm1227_vm0, %v1336_v26  ;;  %v585_v50 = vadd.f32 %v527_v37, %v497_v46  ;;  %v586_v4 = vadd.f32 %v527_v37, %v498_v54  ;;  %v832_v63 = vadd.f32 %v2873_v45, %v2872_v36  ;;  %v928_v57 = vmax.f32 %v560_v31, 0.0  ;;  %v2886_v46 = vld [vmem:[#allocation112_spill] sm:$0xff] }
 0x101   :  { %v833_v10 = vadd.f32 %v2875_v62, %v2874_v2  ;;  %v834_v14 = vadd.f32 %v2877_v3, %v2876_v48  ;;  %v856_v1 = vadd.f32 %v2879_v13, %v2878_v8  ;;  %v857_v9 = vadd.f32 %v2881_v38, %v2880_v17  ;;  %v2891_v2 = vld [vmem:[#allocation49_spill] sm:$0xff]  ;;  %v2892_v62 = vld [vmem:[#allocation115_spill] sm:$0xff]  ;;  %v2893_v48 = vld [vmem:[#allocation50_spill] sm:$0xff] }
 0x102   :  { %v858_v61 = vadd.f32 %v2183_v43, %v2882_v7  ;;  %v880_v18 = vadd.f32 %v832_v63, %v527_v37  ;;  %v929_v41 = vmax.f32 %v561_v0, 0.0  ;;  %v930_v6 = vmax.f32 %v562_v33, 0.0  ;;  %v2884_v43 = vld [vmem:[#allocation111_spill] sm:$0xff]  ;;  %v2888_v33 = vld [vmem:[#allocation113_spill] sm:$0xff]  ;;  %v2894_v3 = vld [vmem:[#allocation116_spill] sm:$0xff] }
 0x103   :  { %v881_v15 = vadd.f32 %v833_v10, %v527_v37  ;;  %v882_v20 = vadd.f32 %v834_v14, %v527_v37  ;;  %v904_v47 = vadd.f32 %v856_v1, %v527_v37  ;;  %v905_v29 = vadd.f32 %v857_v9, %v527_v37  ;;  %v2887_v0 = vld [vmem:[#allocation47_spill] sm:$0xff] }
 0x104   :  { %v906_v23 = vadd.f32 %v858_v61, %v527_v37  ;;  %v952_v52 = vmax.f32 %v584_v40, 0.0  ;;  %v953_v56 = vmax.f32 %v585_v50, 0.0  ;;  %v954_v28 = vmax.f32 %v586_v4, 0.0  ;;  %v2889_v50 = vld [vmem:[#allocation48_spill] sm:$0xff]  ;;  %v2890_v4 = vld [vmem:[#allocation114_spill] sm:$0xff] }
 0x105   :  { %v976_v51 = vmax.f32 %v880_v18, 0.0  ;;  %v977_v53 = vmax.f32 %v881_v15, 0.0  ;;  %v978_v39 = vmax.f32 %v882_v20, 0.0  ;;  %v1000_v44 = vmax.f32 %v904_v47, 0.0  ;;  %v2895_v18 = vld [vmem:[#allocation51_spill] sm:$0xff]  ;;  %v2896_v15 = vld [vmem:[#allocation117_spill] sm:$0xff] }
 0x106   :  { %v1001_v35 = vmax.f32 %v905_v29, 0.0  ;;  %v1002_v5 = vmax.f32 %v906_v23, 0.0  ;;  %v481_v12 = vadd.f32 %v2884_v43, %v2883_v24  ;;  %v482_v22 = vadd.f32 %v2886_v46, %v2885_v49  ;;  %v2898_v20 = vld [vmem:[#allocation118_spill] sm:$0xff]  ;;  %v2899_v29 = vld [vmem:[#allocation53_spill] sm:$0xff]  ;;  %v2900_v23 = vld [vmem:[#allocation119_spill] sm:$0xff] }
 0x107   :  { %v1024_v16 = vmax.f32 %v928_v57, %v976_v51  ;;  %v1025_v26 = vmax.f32 %v929_v41, %v977_v53  ;;  %v1026_v42 = vmax.f32 %v930_v6, %v978_v39  ;;  %v1048_v37 = vmax.f32 %v952_v52, %v1000_v44  ;;  %v2897_v41 = vld [vmem:[#allocation52_spill] sm:$0xff]  ;;  %v2901_v52 = vld [vmem:[#allocation54_spill] sm:$0xff]  ;;  %v2903_v51 = vld [vmem:[#allocation55_spill] sm:$0xff] }
 0x108   :  { %v1049_v54 = vmax.f32 %v953_v56, %v1001_v35  ;;  %v1050_v31 = vmax.f32 %v954_v28, %v1002_v5  ;;  %v483_v40 = vadd.f32 %v2888_v33, %v2887_v0  ;;  %v505_v36 = vadd.f32 %v2890_v4, %v2889_v50  ;;  %v2902_v56 = vld [vmem:[#allocation120_spill] sm:$0xff]  ;;  %v2904_v53 = vld [vmem:[#allocation121_spill] sm:$0xff] }
 0x109   :  { %v1317_v45 = vpack.c.bf16 %v1025_v26, %v1024_v16  ;;  %v1318_v63 = vpack.c.bf16 %v1026_v42, %v1026_v42  ;;  %v506_v10 = vadd.f32 %v2892_v62, %v2891_v2  ;;  %v507_v14 = vadd.f32 %v2894_v3, %v2893_v48  ;;  %v2905_v44 = vld [vmem:[#allocation56_spill] sm:$0xff]  ;;  %v2907_v2 = vld [vmem:[#allocation59_spill] sm:$0xff] }
 0x10a   :  { %v1333_v8 = vpack.c.bf16 %v1049_v54, %v1048_v37  ;;  %v1334_v13 = vpack.c.bf16 %v1050_v31, %v1050_v31  ;;  %v569_v1 = vadd.f32 %v542_v30, %v481_v12  ;;  %v570_v17 = vadd.f32 %v542_v30, %v482_v22 }
 0x10b   :  { %1231 = vst [vmem:[#allocation2 + $0x18] sm:$0xff] %v1317_v45  ;;  %1232 = vst.msk [vmem:[#allocation2 + $0x20] sm:$0xf] %vm1227_vm0, %v1318_v63  ;;  %v571_v38 = vadd.f32 %v542_v30, %v483_v40  ;;  %v593_v9 = vadd.f32 %v542_v30, %v505_v36  ;;  %v594_v7 = vadd.f32 %v542_v30, %v506_v10  ;;  %v2906_v45 = vld [vmem:[#allocation58_spill] sm:$0xff] }
 0x10c   :  { %v595_v61 = vadd.f32 %v542_v30, %v507_v14  ;;  %1247 = vst [vmem:[#allocation2 + $0x78] sm:$0xff] %v1333_v8  ;;  %1248 = vst.msk [vmem:[#allocation2 + $0x80] sm:$0xf] %vm1227_vm0, %v1334_v13  ;;  %v841_v57 = vadd.f32 %v2896_v15, %v2895_v18  ;;  %v842_v47 = vadd.f32 %v2898_v20, %v2897_v41  ;;  %v937_v5 = vmax.f32 %v569_v1, 0.0  ;;  %v537_v14 = vpop.permute.xlu0 %536  ;;  %v2908_v13 = vld [vmem:[#allocation60_spill] sm:$0xff]  ;;  %v2911_v15 = vld [vmem:[#allocation63_spill] sm:$0xff] }
 0x10d   :  { %v843_v6 = vadd.f32 %v2900_v23, %v2899_v29  ;;  %v865_v28 = vadd.f32 %v2902_v56, %v2901_v52  ;;  %v866_v39 = vadd.f32 %v2904_v53, %v2903_v51  ;;  %v867_v35 = vadd.f32 %v2221_v25, %v2905_v44  ;;  %v2912_v29 = vld [vmem:[#allocation64_spill] sm:$0xff]  ;;  %v2913_v23 = vld [vmem:[#allocation65_spill] sm:$0xff]  ;;  %v2914_v52 = vld [vmem:[#allocation66_spill] sm:$0xff] }
 0x10e   :  { %v938_v24 = vmax.f32 %v570_v17, 0.0  ;;  %v889_v43 = vadd.f32 %v841_v57, %v542_v30  ;;  %v890_v12 = vadd.f32 %v842_v47, %v542_v30  ;;  %v939_v26 = vmax.f32 %v571_v38, 0.0  ;;  %v2909_v17 = vld [vmem:[#allocation61_spill] sm:$0xff]  ;;  %v2915_v56 = vld [vmem:[#allocation67_spill] sm:$0xff]  ;;  %v2916_v51 = vld [vmem:[#allocation68_spill] sm:$0xff] }
 0x10f   :  { %v891_v49 = vadd.f32 %v843_v6, %v542_v30  ;;  %v913_v46 = vadd.f32 %v865_v28, %v542_v30  ;;  %v914_v22 = vadd.f32 %v866_v39, %v542_v30  ;;  %v915_v16 = vadd.f32 %v867_v35, %v542_v30  ;;  %v2917_v53 = vld [vmem:[#allocation122_spill] sm:$0xff]  ;;  %v2918_v44 = vld [vmem:[#allocation69_spill] sm:$0xff]  ;;  %v2919_v35 = vld [vmem:[#allocation123_spill] sm:$0xff] }
 0x110   :  { %v961_v42 = vmax.f32 %v593_v9, 0.0  ;;  %v962_v37 = vmax.f32 %v594_v7, 0.0  ;;  %v963_v54 = vmax.f32 %v595_v61, 0.0  ;;  %v985_v31 = vmax.f32 %v889_v43, 0.0  ;;  %v2910_v9 = vld [vmem:[#allocation62_spill] sm:$0xff] }
 0x111   :  { %v986_v0 = vmax.f32 %v890_v12, 0.0  ;;  %v987_v33 = vmax.f32 %v891_v49, 0.0  ;;  %v1009_v40 = vmax.f32 %v913_v46, 0.0  ;;  %v1010_v50 = vmax.f32 %v914_v22, 0.0 }
 0x112   :  { %v1011_v4 = vmax.f32 %v915_v16, 0.0  ;;  %v1033_v36 = vmax.f32 %v937_v5, %v985_v31  ;;  %v478_v63 = vadd.f32 %v2224_v19, %v2906_v45  ;;  %v479_v62 = vadd.f32 %v2227_v34, %v2907_v2 }
 0x113   :  { %v1034_v25 = vmax.f32 %v938_v24, %v986_v0  ;;  %v1035_v10 = vmax.f32 %v939_v26, %v987_v33  ;;  %v1057_v30 = vmax.f32 %v961_v42, %v1009_v40  ;;  %v1058_v48 = vmax.f32 %v962_v37, %v1010_v50  ;;  %v2920_v40 = vld [vmem:[#allocation5_spill] sm:$0xff]  ;;  %v2921_v50 = vld [vmem:[#allocation44_spill] sm:$0xff] }
 0x114   :  { %v1059_v3 = vmax.f32 %v963_v54, %v1011_v4  ;;  %v480_v1 = vadd.f32 %v2230_v27, %v2908_v13  ;;  %v502_v38 = vadd.f32 %v2233_v55, %v2909_v17  ;;  %v503_v7 = vadd.f32 %v2236_v21, %v2910_v9  ;;  %v2925_v17 = vld [vmem:[#allocation9_spill] sm:$0xff]  ;;  %v2926_v9 = vld [vmem:[#allocation10_spill] sm:$0xff] }
 0x115   :  { %v1323_v8 = vpack.c.bf16 %v1034_v25, %v1033_v36  ;;  %v1324_v61 = vpack.c.bf16 %v1035_v10, %v1035_v10  ;;  %v1339_v19 = vpack.c.bf16 %v1058_v48, %v1057_v30  ;;  %v504_v34 = vadd.f32 %v2239_v32, %v2911_v15  ;;  %v2922_v36 = vld [vmem:[#allocation6_spill] sm:$0xff]  ;;  %v2923_v48 = vld [vmem:[#allocation7_spill] sm:$0xff] }
 0x116   :  { %v1340_v18 = vpack.c.bf16 %v1059_v3, %v1059_v3  ;;  %v566_v57 = vadd.f32 %v537_v14, %v478_v63  ;;  %v567_v41 = vadd.f32 %v537_v14, %v479_v62  ;;  %v568_v20 = vadd.f32 %v537_v14, %v480_v1  ;;  %v2928_v15 = vld [vmem:[#allocation82_spill] sm:$0xff] }
 0x117   :  { %1237 = vst [vmem:[#allocation2 + $0x3c] sm:$0xff] %v1323_v8  ;;  %v590_v47 = vadd.f32 %v537_v14, %v502_v38  ;;  %1238 = vst.msk [vmem:[#allocation2 + $0x44] sm:$0xf] %vm1227_vm0, %v1324_v61  ;;  %v591_v27 = vadd.f32 %v537_v14, %v503_v7  ;;  %v592_v55 = vadd.f32 %v537_v14, %v504_v34 }
 0x118   :  { %1253 = vst [vmem:[#allocation2 + $0x9c] sm:$0xff] %v1339_v19  ;;  %1254 = vst.msk [vmem:[#allocation2 + $0xa4] sm:$0xf] %vm1227_vm0, %v1340_v18  ;;  %v838_v21 = vadd.f32 %v2242_v11, %v2912_v29  ;;  %v839_v6 = vadd.f32 %v2245_v58, %v2913_v23  ;;  %v840_v32 = vadd.f32 %v2248_v59, %v2914_v52  ;;  %v934_v12 = vmax.f32 %v566_v57, 0.0  ;;  %v2927_v18 = vld [vmem:[#allocation11_spill] sm:$0xff]  ;;  %v2929_v57 = vld [vmem:[#allocation12_spill] sm:$0xff] }
 0x119   :  { %v862_v28 = vadd.f32 %v2251_v60, %v2915_v56  ;;  %v863_v39 = vadd.f32 %v2917_v53, %v2916_v51  ;;  %v864_v5 = vadd.f32 %v2919_v35, %v2918_v44  ;;  %v935_v49 = vmax.f32 %v567_v41, 0.0  ;;  %v2932_v29 = vld [vmem:[#allocation15_spill] sm:$0xff]  ;;  %v2933_v23 = vld [vmem:[#allocation16_spill] sm:$0xff]  ;;  %v2934_v56 = vld [vmem:[#allocation17_spill] sm:$0xff] }
 0x11a   :  { %v886_v24 = vadd.f32 %v838_v21, %v537_v14  ;;  %v887_v43 = vadd.f32 %v839_v6, %v537_v14  ;;  %v888_v11 = vadd.f32 %v840_v32, %v537_v14  ;;  %v936_v16 = vmax.f32 %v568_v20, 0.0  ;;  %v2930_v20 = vld [vmem:[#allocation13_spill] sm:$0xff]  ;;  %v2936_v53 = vld [vmem:[#allocation18_spill] sm:$0xff] }
 0x11b   :  { %v910_v46 = vadd.f32 %v862_v28, %v537_v14  ;;  %v911_v22 = vadd.f32 %v863_v39, %v537_v14  ;;  %v912_v58 = vadd.f32 %v864_v5, %v537_v14  ;;  %v958_v26 = vmax.f32 %v590_v47, 0.0  ;;  %v2924_v14 = vld [vmem:[#allocation8_spill] sm:$0xff]  ;;  %v2935_v28 = vld [vmem:[#allocation110_spill] sm:$0xff] }
 0x11c   :  { %v959_v59 = vmax.f32 %v591_v27, 0.0  ;;  %v960_v42 = vmax.f32 %v592_v55, 0.0  ;;  %v982_v37 = vmax.f32 %v886_v24, 0.0  ;;  %v983_v60 = vmax.f32 %v887_v43, 0.0  ;;  %v2931_v27 = vld [vmem:[#allocation14_spill] sm:$0xff]  ;;  %v552_v43 = vpop.permute.xlu1 %551 }
 0x11d   :  { %v984_v54 = vmax.f32 %v888_v11, 0.0  ;;  %v1006_v31 = vmax.f32 %v910_v46, 0.0  ;;  %v1007_v0 = vmax.f32 %v911_v22, 0.0  ;;  %v1008_v33 = vmax.f32 %v912_v58, 0.0  ;;  %v2938_v11 = vld [vmem:[#allocation20_spill] sm:$0xff]  ;;  %v2939_v22 = vld [vmem:[#allocation21_spill] sm:$0xff] }
 0x11e   :  { %v151_v4 = vmul.f32 %v2921_v50, %v2920_v40  ;;  %v152_v25 = vmul.f32 %v2921_v50, %v2922_v36  ;;  %v1030_v45 = vmax.f32 %v934_v12, %v982_v37  ;;  %v1031_v63 = vmax.f32 %v935_v49, %v983_v60  ;;  %v2937_v12 = vld [vmem:[#allocation19_spill] sm:$0xff] }
 0x11f   :  { %v1032_v2 = vmax.f32 %v936_v16, %v984_v54  ;;  %v1054_v62 = vmax.f32 %v958_v26, %v1006_v31  ;;  %v1055_v10 = vmax.f32 %v959_v59, %v1007_v0  ;;  %v1056_v30 = vmax.f32 %v960_v42, %v1008_v33  ;;  %v2940_v16 = vld [vmem:[#allocation22_spill] sm:$0xff] }
 0x120   :  { %v153_v3 = vmul.f32 %v2921_v50, %v2923_v48  ;;  %v175_v8 = vmul.f32 %v2921_v50, %v2924_v14  ;;  %v1321_v13 = vpack.c.bf16 %v1031_v63, %v1030_v45  ;;  %v176_v38 = vmul.f32 %v2921_v50, %v2925_v17 }
 0x121   :  { %v1322_v1 = vpack.c.bf16 %v1032_v2, %v1032_v2  ;;  %v177_v7 = vmul.f32 %v2921_v50, %v2926_v9  ;;  %v1337_v61 = vpack.c.bf16 %v1055_v10, %v1054_v62  ;;  %v1338_v19 = vpack.c.bf16 %v1056_v30, %v1056_v30 }
 0x122   :  { %v271_v34 = vmul.f32 %v2928_v15, %v2927_v18  ;;  %v272_v41 = vmul.f32 %v2928_v15, %v2929_v57  ;;  %1235 = vst [vmem:[#allocation2 + $0x30] sm:$0xff] %v1321_v13  ;;  %v273_v47 = vmul.f32 %v2928_v15, %v2930_v20  ;;  %v295_v55 = vmul.f32 %v2928_v15, %v2931_v27 }
 0x123   :  { %1236 = vst.msk [vmem:[#allocation2 + $0x38] sm:$0xf] %vm1227_vm0, %v1322_v1  ;;  %v296_v21 = vmul.f32 %v2928_v15, %v2932_v29  ;;  %v297_v6 = vmul.f32 %v2928_v15, %v2933_v23  ;;  %1251 = vst [vmem:[#allocation2 + $0x90] sm:$0xff] %v1337_v61  ;;  %v439_v51 = vmul.f32 %v2935_v28, %v2934_v56 }
 0x124   :  { %1252 = vst.msk [vmem:[#allocation2 + $0x98] sm:$0xf] %vm1227_vm0, %v1338_v19  ;;  %v319_v52 = vadd.f32 %v271_v34, %v151_v4  ;;  %v320_v32 = vadd.f32 %v272_v41, %v152_v25  ;;  %v440_v39 = vmul.f32 %v2935_v28, %v2936_v53  ;;  %v321_v44 = vadd.f32 %v273_v47, %v153_v3  ;;  %v2941_v41 = vld [vmem:[#allocation23_spill] sm:$0xff] }
 0x125   :  { %v343_v35 = vadd.f32 %v295_v55, %v175_v8  ;;  %v344_v5 = vadd.f32 %v296_v21, %v176_v38  ;;  %v345_v24 = vadd.f32 %v297_v6, %v177_v7  ;;  %v441_v49 = vmul.f32 %v2935_v28, %v2937_v12  ;;  %v2942_v55 = vld [vmem:[#allocation24_spill] sm:$0xff] }
 0x126   :  { %v463_v46 = vmul.f32 %v2935_v28, %v2938_v11  ;;  %v464_v58 = vmul.f32 %v2935_v28, %v2939_v22  ;;  %v465_v26 = vmul.f32 %v2935_v28, %v2940_v16  ;;  %v487_v59 = vadd.f32 %v439_v51, %v319_v52 }
 0x127   :  { %v488_v42 = vadd.f32 %v440_v39, %v320_v32  ;;  %v623_v37 = vmul.f32 %v2927_v18, %v2921_v50  ;;  %v624_v60 = vmul.f32 %v2929_v57, %v2921_v50  ;;  %v489_v54 = vadd.f32 %v441_v49, %v321_v44  ;;  %v2943_v39 = vld [vmem:[#allocation25_spill] sm:$0xff]  ;;  %v2946_v49 = vld [vmem:[#allocation28_spill] sm:$0xff] }
 0x128   :  { %v511_v31 = vadd.f32 %v463_v46, %v343_v35  ;;  %v512_v0 = vadd.f32 %v464_v58, %v344_v5  ;;  %v513_v33 = vadd.f32 %v465_v26, %v345_v24  ;;  %v575_v4 = vadd.f32 %v552_v43, %v487_v59  ;;  %v2944_v35 = vld [vmem:[#allocation26_spill] sm:$0xff] }
 0x129   :  { %v576_v25 = vadd.f32 %v552_v43, %v488_v42  ;;  %v625_v45 = vmul.f32 %v2930_v20, %v2921_v50  ;;  %v647_v63 = vmul.f32 %v2931_v27, %v2921_v50  ;;  %v577_v2 = vadd.f32 %v552_v43, %v489_v54 }
 0x12a   :  { %v599_v62 = vadd.f32 %v552_v43, %v511_v31  ;;  %v600_v10 = vadd.f32 %v552_v43, %v512_v0  ;;  %v601_v30 = vadd.f32 %v552_v43, %v513_v33  ;;  %v648_v3 = vmul.f32 %v2932_v29, %v2921_v50 }
 0x12b   :  { %v649_v8 = vmul.f32 %v2933_v23, %v2921_v50  ;;  %v671_v13 = vmul.f32 %v2934_v56, %v2928_v15  ;;  %v672_v1 = vmul.f32 %v2936_v53, %v2928_v15  ;;  %v673_v38 = vmul.f32 %v2937_v12, %v2928_v15 }
 0x12c   :  { %v695_v7 = vmul.f32 %v2938_v11, %v2928_v15  ;;  %v696_v61 = vmul.f32 %v2939_v22, %v2928_v15  ;;  %v697_v19 = vmul.f32 %v2940_v16, %v2928_v15  ;;  %v799_v47 = vmul.f32 %v2941_v41, %v2935_v28  ;;  %v2945_v15 = vld [vmem:[#allocation27_spill] sm:$0xff] }
 0x12d   :  { %v719_v34 = vadd.f32 %v671_v13, %v623_v37  ;;  %v720_v50 = vadd.f32 %v672_v1, %v624_v60  ;;  %v800_v21 = vmul.f32 %v2942_v55, %v2935_v28  ;;  %v721_v6 = vadd.f32 %v673_v38, %v625_v45 }
 0x12e   :  { %v743_v52 = vadd.f32 %v695_v7, %v647_v63  ;;  %v744_v32 = vadd.f32 %v696_v61, %v648_v3  ;;  %v745_v51 = vadd.f32 %v697_v19, %v649_v8  ;;  %v801_v44 = vmul.f32 %v2943_v39, %v2935_v28 }
 0x12f   :  { %v823_v5 = vmul.f32 %v2944_v35, %v2935_v28  ;;  %v824_v24 = vmul.f32 %v2945_v15, %v2935_v28  ;;  %v825_v46 = vmul.f32 %v2946_v49, %v2935_v28  ;;  %v847_v58 = vadd.f32 %v799_v47, %v719_v34 }
 0x130   :  { %v848_v26 = vadd.f32 %v800_v21, %v720_v50  ;;  %v943_v59 = vmax.f32 %v575_v4, 0.0  ;;  %v944_v42 = vmax.f32 %v576_v25, 0.0  ;;  %v849_v37 = vadd.f32 %v801_v44, %v721_v6  ;;  %v2947_v21 = vld [vmem:[#allocation57_spill] sm:$0xff] }
 0x131   :  { %v871_v60 = vadd.f32 %v823_v5, %v743_v52  ;;  %v872_v54 = vadd.f32 %v824_v24, %v744_v32  ;;  %v873_v31 = vadd.f32 %v825_v46, %v745_v51  ;;  %v895_v0 = vadd.f32 %v847_v58, %v552_v43  ;;  %v2948_v46 = vld [vmem:[#allocation83_spill] sm:$0xff] }
 0x132   :  { %v896_v33 = vadd.f32 %v848_v26, %v552_v43  ;;  %v945_v45 = vmax.f32 %v577_v2, 0.0  ;;  %v967_v63 = vmax.f32 %v599_v62, 0.0  ;;  %v897_v3 = vadd.f32 %v849_v37, %v552_v43 }
 0x133   :  { %v919_v8 = vadd.f32 %v871_v60, %v552_v43  ;;  %v920_v13 = vadd.f32 %v872_v54, %v552_v43  ;;  %v921_v1 = vadd.f32 %v873_v31, %v552_v43  ;;  %v968_v38 = vmax.f32 %v600_v10, 0.0 }
 0x134   :  { %v969_v7 = vmax.f32 %v601_v30, 0.0  ;;  %v991_v61 = vmax.f32 %v895_v0, 0.0  ;;  %v992_v28 = vmax.f32 %v896_v33, 0.0  ;;  %v993_v19 = vmax.f32 %v897_v3, 0.0  ;;  %v547_v33 = vpop.permute.xlu0 %546 }
 0x135   :  { %v1015_v34 = vmax.f32 %v919_v8, 0.0  ;;  %v1016_v4 = vmax.f32 %v920_v13, 0.0  ;;  %v1017_v25 = vmax.f32 %v921_v1, 0.0  ;;  %v148_v6 = vmul.f32 %v2947_v21, %v2920_v40 }
 0x136   :  { %v1039_v50 = vmax.f32 %v943_v59, %v991_v61  ;;  %v1040_v47 = vmax.f32 %v944_v42, %v992_v28  ;;  %v149_v2 = vmul.f32 %v2947_v21, %v2922_v36  ;;  %v1041_v62 = vmax.f32 %v945_v45, %v993_v19  ;;  %v2949_v59 = vld [vmem:[#allocation124_spill] sm:$0xff] }
 0x137   :  { %v1063_v52 = vmax.f32 %v967_v63, %v1015_v34  ;;  %v1064_v32 = vmax.f32 %v968_v38, %v1016_v4  ;;  %v1065_v43 = vmax.f32 %v969_v7, %v1017_v25  ;;  %v150_v30 = vmul.f32 %v2947_v21, %v2923_v48 }
 0x138   :  { %v1327_v10 = vpack.c.bf16 %v1040_v47, %v1039_v50  ;;  %v172_v51 = vmul.f32 %v2947_v21, %v2924_v14  ;;  %v173_v44 = vmul.f32 %v2947_v21, %v2925_v17  ;;  %v1328_v5 = vpack.c.bf16 %v1041_v62, %v1041_v62 }
 0x139   :  { %v1343_v24 = vpack.c.bf16 %v1064_v32, %v1063_v52  ;;  %v1344_v40 = vpack.c.bf16 %v1065_v43, %v1065_v43  ;;  %v174_v36 = vmul.f32 %v2947_v21, %v2926_v9  ;;  %v268_v58 = vmul.f32 %v2948_v46, %v2927_v18 }
 0x13a   :  { %1241 = vst [vmem:[#allocation2 + $0x54] sm:$0xff] %v1327_v10  ;;  %v269_v26 = vmul.f32 %v2948_v46, %v2929_v57  ;;  %v270_v48 = vmul.f32 %v2948_v46, %v2930_v20  ;;  %v292_v14 = vmul.f32 %v2948_v46, %v2931_v27  ;;  %1242 = vst.msk [vmem:[#allocation2 + $0x5c] sm:$0xf] %vm1227_vm0, %v1328_v5 }
 0x13b   :  { %1257 = vst [vmem:[#allocation2 + $0xb4] sm:$0xff] %v1343_v24  ;;  %1258 = vst.msk [vmem:[#allocation2 + $0xbc] sm:$0xf] %vm1227_vm0, %v1344_v40  ;;  %v293_v17 = vmul.f32 %v2948_v46, %v2932_v29  ;;  %v294_v9 = vmul.f32 %v2948_v46, %v2933_v23  ;;  %v436_v42 = vmul.f32 %v2949_v59, %v2934_v56 }
 0x13c   :  { %v437_v37 = vmul.f32 %v2949_v59, %v2936_v53  ;;  %v316_v60 = vadd.f32 %v268_v58, %v148_v6  ;;  %v317_v54 = vadd.f32 %v269_v26, %v149_v2  ;;  %v318_v31 = vadd.f32 %v270_v48, %v150_v30 }
 0x13d   :  { %v340_v0 = vadd.f32 %v292_v14, %v172_v51  ;;  %v341_v45 = vadd.f32 %v293_v17, %v173_v44  ;;  %v342_v63 = vadd.f32 %v294_v9, %v174_v36  ;;  %v438_v3 = vmul.f32 %v2949_v59, %v2937_v12 }
 0x13e   :  { %v460_v8 = vmul.f32 %v2949_v59, %v2938_v11  ;;  %v461_v13 = vmul.f32 %v2949_v59, %v2939_v22  ;;  %v462_v1 = vmul.f32 %v2949_v59, %v2940_v16  ;;  %v484_v38 = vadd.f32 %v436_v42, %v316_v60 }
 0x13f   :  { %v485_v7 = vadd.f32 %v437_v37, %v317_v54  ;;  %v486_v61 = vadd.f32 %v438_v3, %v318_v31  ;;  %v620_v19 = vmul.f32 %v2927_v18, %v2947_v21  ;;  %v621_v34 = vmul.f32 %v2929_v57, %v2947_v21 }
 0x140   :  { %v508_v28 = vadd.f32 %v460_v8, %v340_v0  ;;  %v509_v4 = vadd.f32 %v461_v13, %v341_v45  ;;  %v510_v25 = vadd.f32 %v462_v1, %v342_v63  ;;  %v572_v50 = vadd.f32 %v547_v33, %v484_v38 }
 0x141   :  { %v573_v47 = vadd.f32 %v547_v33, %v485_v7  ;;  %v574_v6 = vadd.f32 %v547_v33, %v486_v61  ;;  %v622_v62 = vmul.f32 %v2930_v20, %v2947_v21  ;;  %v644_v52 = vmul.f32 %v2931_v27, %v2947_v21 }
 0x142   :  { %v596_v2 = vadd.f32 %v547_v33, %v508_v28  ;;  %v597_v32 = vadd.f32 %v547_v33, %v509_v4  ;;  %v598_v43 = vadd.f32 %v547_v33, %v510_v25  ;;  %v645_v18 = vmul.f32 %v2932_v29, %v2947_v21 }
 0x143   :  { %v646_v57 = vmul.f32 %v2933_v23, %v2947_v21  ;;  %v668_v10 = vmul.f32 %v2934_v56, %v2948_v46  ;;  %v669_v30 = vmul.f32 %v2936_v53, %v2948_v46  ;;  %v670_v20 = vmul.f32 %v2937_v12, %v2948_v46 }
 0x144   :  { %v692_v27 = vmul.f32 %v2938_v11, %v2948_v46  ;;  %v693_v51 = vmul.f32 %v2939_v22, %v2948_v46  ;;  %v694_v29 = vmul.f32 %v2940_v16, %v2948_v46  ;;  %v796_v23 = vmul.f32 %v2941_v41, %v2949_v59 }
 0x145   :  { %v797_v56 = vmul.f32 %v2942_v55, %v2949_v59  ;;  %v716_v21 = vadd.f32 %v668_v10, %v620_v19  ;;  %v717_v53 = vadd.f32 %v669_v30, %v621_v34  ;;  %v718_v44 = vadd.f32 %v670_v20, %v622_v62 }
 0x146   :  { %v740_v5 = vadd.f32 %v692_v27, %v644_v52  ;;  %v741_v12 = vadd.f32 %v693_v51, %v645_v18  ;;  %v742_v24 = vadd.f32 %v694_v29, %v646_v57  ;;  %v798_v11 = vmul.f32 %v2943_v39, %v2949_v59 }
 0x147   :  { %v820_v22 = vmul.f32 %v2944_v35, %v2949_v59  ;;  %v821_v16 = vmul.f32 %v2945_v15, %v2949_v59  ;;  %v822_v41 = vmul.f32 %v2946_v49, %v2949_v59  ;;  %v844_v40 = vadd.f32 %v796_v23, %v716_v21 }
 0x148   :  { %v845_v55 = vadd.f32 %v797_v56, %v717_v53  ;;  %v846_v36 = vadd.f32 %v798_v11, %v718_v44  ;;  %v940_v58 = vmax.f32 %v572_v50, 0.0  ;;  %v941_v26 = vmax.f32 %v573_v47, 0.0 }
 0x149   :  { %v868_v46 = vadd.f32 %v820_v22, %v740_v5  ;;  %v869_v48 = vadd.f32 %v821_v16, %v741_v12  ;;  %v870_v14 = vadd.f32 %v822_v41, %v742_v24  ;;  %v892_v17 = vadd.f32 %v844_v40, %v547_v33 }
 0x14a   :  { %v893_v9 = vadd.f32 %v845_v55, %v547_v33  ;;  %v894_v39 = vadd.f32 %v846_v36, %v547_v33  ;;  %v942_v37 = vmax.f32 %v574_v6, 0.0  ;;  %v964_v35 = vmax.f32 %v596_v2, 0.0 }
 0x14b   :  { %v916_v42 = vadd.f32 %v868_v46, %v547_v33  ;;  %v917_v60 = vadd.f32 %v869_v48, %v547_v33  ;;  %v918_v54 = vadd.f32 %v870_v14, %v547_v33  ;;  %v965_v15 = vmax.f32 %v597_v32, 0.0 }
 0x14c   :  { %v966_v31 = vmax.f32 %v598_v43, 0.0  ;;  %v988_v0 = vmax.f32 %v892_v17, 0.0  ;;  %v989_v49 = vmax.f32 %v893_v9, 0.0  ;;  %v990_v59 = vmax.f32 %v894_v39, 0.0 }
 0x14d   :  { %v1012_v45 = vmax.f32 %v916_v42, 0.0  ;;  %v1013_v63 = vmax.f32 %v917_v60, 0.0  ;;  %v1014_v3 = vmax.f32 %v918_v54, 0.0 }
 0x14e   :  { %v1036_v8 = vmax.f32 %v940_v58, %v988_v0  ;;  %v1037_v13 = vmax.f32 %v941_v26, %v989_v49  ;;  %v1038_v1 = vmax.f32 %v942_v37, %v990_v59 }
 0x14f   :  { %v1060_v38 = vmax.f32 %v964_v35, %v1012_v45  ;;  %v1061_v7 = vmax.f32 %v965_v15, %v1013_v63  ;;  %v1062_v61 = vmax.f32 %v966_v31, %v1014_v3 }
 0x150   :  { %v1325_v28 = vpack.c.bf16 %v1037_v13, %v1036_v8  ;;  %v1326_v19 = vpack.c.bf16 %v1038_v1, %v1038_v1 }
 0x151   :  { %v1341_v34 = vpack.c.bf16 %v1061_v7, %v1060_v38  ;;  %v1342_v33 = vpack.c.bf16 %v1062_v61, %v1062_v61 }
 0x152   :  { %1239 = vst [vmem:[#allocation2 + $0x48] sm:$0xff] %v1325_v28  ;;  %1240 = vst.msk [vmem:[#allocation2 + $0x50] sm:$0xf] %vm1227_vm0, %v1326_v19 }
 0x153   :  { %1255 = vst [vmem:[#allocation2 + $0xa8] sm:$0xff] %v1341_v34  ;;  %1256 = vst.msk [vmem:[#allocation2 + $0xb0] sm:$0xf] %vm1227_vm0, %v1342_v33 }
 0x154   :  { %1362 = shalt.err (!%p1359_p4)
}
 0x155   :  { %s1375_s11 = smov 192   ;;  %s1376_s12 = smov 12  }
 0x156   :  { %1270 = dma.vmem_to_hbm [thread:$0]  %s1265_s9, 3072, %s2571_s3, [#allocation3], %s1375_s11, %s1375_s11, %s1376_s12  }
 0x157   :  { %1371 = dma.done.wait [#allocation3], 3072  }
 0x158   :  { %1372 = vsyncadd [#allocation3], 4294964224 }
 0x159   :  { %1274 = vsyncpa [#allocation3], 1 }

</bundles_post_ra>
